<compile_context>
chip_gen: v6e
topology: v6e:2x2x1
jax: 0.10.0
libtpu: 0.0.40
codegen_flags: <defaults>
</compile_context>

<pallas_src>
import math

import jax
import jax.numpy as jnp
from jax.experimental import pallas as pl
from jax.experimental.pallas import tpu as pltpu


HIDDEN_SIZES = [784, 512, 256, 128]
NUM_CLASSES = 10
CLS_PAD = 128            # final layer padded to a full 128-lane width
NEG_INF = -1e30          # finite mask value baked into padded bias lanes
TB_CAP = 2048            # max batch-tile rows (fits VMEM on v5e/v6e/v7x)


def _round_up(x, m):
    return ((x + m - 1) // m) * m


def _choose_batch_tile(batch):
    """Batch tile: multiple of 8 sublanes, capped at TB_CAP, and sized so the
    grid has >= 2 steps whenever the batch allows it (v7x megacore)."""
    if batch <= 8:
        return 8
    half = _round_up(-(-batch // 2), 8)   # ceil(B/2) rounded up to 8
    return max(8, min(TB_CAP, half))


def _fcnet_kernel(x_ref,
                  w1_ref, b1_ref,
                  w2_ref, b2_ref,
                  w3_ref, b3_ref,
                  w4_ref, b4_ref,
                  o_ref):
    """FCNet forward on one (TB, 784) bf16 batch tile. Weights stay VMEM-resident."""
    x = x_ref[...]                                        # already bf16

    # Layer 1: Linear(784 -> 512) + ReLU   (Dropout = identity in eval)
    h = jnp.dot(x, w1_ref[...], preferred_element_type=jnp.float32) + b1_ref[...]
    h = jnp.maximum(h, 0.0)

    # Layer 2: Linear(512 -> 256) + ReLU
    h = jnp.dot(h.astype(jnp.bfloat16), w2_ref[...],
                preferred_element_type=jnp.float32) + b2_ref[...]
    h = jnp.maximum(h, 0.0)

    # Layer 3: Linear(256 -> 128) + ReLU
    h = jnp.dot(h.astype(jnp.bfloat16), w3_ref[...],
                preferred_element_type=jnp.float32) + b3_ref[...]
    h = jnp.maximum(h, 0.0)

    # Output layer: Linear(128 -> 10), padded to 128 lanes. Padded class lanes
    # already carry a -1e30 bias (baked in the wrapper), so no in-kernel mask.
    logits = jnp.dot(h.astype(jnp.bfloat16), w4_ref[...],
                     preferred_element_type=jnp.float32) + b4_ref[...]

    # Stable log_softmax over the class axis (pad lanes contribute exp(-huge)=0).
    m = jnp.max(logits, axis=-1, keepdims=True)
    shifted = logits - m
    lse = jnp.log(jnp.sum(jnp.exp(shifted), axis=-1, keepdims=True))
    o_ref[...] = (shifted - lse).astype(o_ref.dtype)


def fcnet_forward(x_nchw, params):
    """x_nchw: (B, 1, 28, 28) -> (B, 10) log-probabilities."""
    B = x_nchw.shape[0]
    d_in = HIDDEN_SIZES[0]
    # nn.Flatten on NCHW, then bf16 for the streaming input (matches the
    # reference's bf16 cast before the first matmul; halves HBM traffic).
    x2d = x_nchw.reshape(B, d_in).astype(jnp.bfloat16)

    (w1, b1), (w2, b2), (w3, b3), (w4, b4) = params

    # Pad the final layer to a lane-dense 128-wide output; bake the class mask
    # into the bias (pad lanes get -1e30, pad weight columns stay zero).
    w4p = jnp.zeros((w4.shape[0], CLS_PAD), w4.dtype).at[:, :NUM_CLASSES].set(w4)
    b4p = jnp.full((1, CLS_PAD), NEG_INF, jnp.float32).at[:, :NUM_CLASSES].set(b4)

    tb = _choose_batch_tile(B)
    grid = (pl.cdiv(B, tb),)   # Pallas clips/masks the ragged tail block; no jnp.pad.

    def resident(arr):
        # Constant block index across the batch axis -> stays in VMEM, no re-DMA.
        return pl.BlockSpec(arr.shape, lambda i: (0,) * arr.ndim)

    flops = 2 * B * (784 * 512 + 512 * 256 + 256 * 128 + 128 * CLS_PAD)
    weight_bytes = sum(int(a.size) * a.dtype.itemsize
                       for a in (w1, b1, w2, b2, w3, b3, w4p, b4p))
    bytes_accessed = weight_bytes + B * d_in * 2 + B * CLS_PAD * 4

    out = pl.pallas_call(
        _fcnet_kernel,
        out_shape=jax.ShapeDtypeStruct((B, CLS_PAD), jnp.float32),
        grid_spec=pltpu.PrefetchScalarGridSpec(
            num_scalar_prefetch=0,
            grid=grid,
            in_specs=[
                pl.BlockSpec((tb, d_in), lambda i: (i, 0)),
                resident(w1), resident(b1),
                resident(w2), resident(b2),
                resident(w3), resident(b3),
                resident(w4p), resident(b4p),
            ],
            out_specs=pl.BlockSpec((tb, CLS_PAD), lambda i: (i, 0)),
        ),
        compiler_params=pltpu.CompilerParams(
            dimension_semantics=("parallel",),   # megacore sharding on v7x
            vmem_limit_bytes=32 << 20,           # ~10 MB peak at tb=2048
        ),
        cost_estimate=pl.CostEstimate(
            flops=flops,
            transcendentals=B * (CLS_PAD + 1),   # exp per lane + log per row
            bytes_accessed=bytes_accessed,
        ),
    )(x2d, w1, b1, w2, b2, w3, b3, w4p, b4p)

    return out[:, :NUM_CLASSES]


def init_params(key):
    """Deterministic init mimicking nn.Linear default: U(-1/sqrt(fan_in), +1/sqrt(fan_in)).

    Weights are stored transposed to (in_features, out_features) and cast to
    bf16 (MXU inputs); biases stay f32 as (1, out_features) for 2D broadcast.
    """
    dims = HIDDEN_SIZES + [NUM_CLASSES]
    params = []
    for i in range(len(dims) - 1):
        fan_in, fan_out = dims[i], dims[i + 1]
        key, kw, kb = jax.random.split(key, 3)
        bound = 1.0 / math.sqrt(fan_in)
        w = jax.random.uniform(kw, (fan_in, fan_out), jnp.float32, -bound, bound)
        b = jax.random.uniform(kb, (1, fan_out), jnp.float32, -bound, bound)
        params.append((w.astype(jnp.bfloat16), b))
    return params


def fcnet_reference(x_nchw, params):
    """Pure-JAX reference with the same bf16-input / f32-accumulate math."""
    B = x_nchw.shape[0]
    h = x_nchw.reshape(B, HIDDEN_SIZES[0]).astype(jnp.float32)
    for i, (w, b) in enumerate(params):
        h = jnp.dot(h.astype(jnp.bfloat16), w,
                    preferred_element_type=jnp.float32) + b
        if i < len(params) - 1:
            h = jnp.maximum(h, 0.0)
    return jax.nn.log_softmax(h, axis=1)


if __name__ == "__main__":
    key = jax.random.PRNGKey(0)
    key, kx = jax.random.split(key)

    B = 8
    x = jax.random.normal(kx, (B, 1, 28, 28), jnp.float32)  # NCHW, MNIST-shaped

    params = init_params(jax.random.PRNGKey(0))

    out = jax.block_until_ready(fcnet_forward(x, params))
    ref = fcnet_reference(x, params)

    assert out.shape == (B, NUM_CLASSES), out.shape
    assert bool(jnp.all(jnp.isfinite(out))), "non-finite output"
    assert jnp.allclose(out, ref, atol=1e-2, rtol=1e-2), \
        f"mismatch vs reference, max abs diff = {float(jnp.max(jnp.abs(out - ref)))}"

    print("KERNEL_OK")
</pallas_src>

<mosaic_0001>
module attributes {stable_mosaic.version = 11 : i64} {
  func.func @_fcnet_kernel(%arg0: i32, %arg1: memref<8x784xbf16, #tpu.memory_space<vmem>>, %arg2: memref<784x512xbf16, #tpu.memory_space<vmem>>, %arg3: memref<1x512xf32, #tpu.memory_space<vmem>>, %arg4: memref<512x256xbf16, #tpu.memory_space<vmem>>, %arg5: memref<1x256xf32, #tpu.memory_space<vmem>>, %arg6: memref<256x128xbf16, #tpu.memory_space<vmem>>, %arg7: memref<1x128xf32, #tpu.memory_space<vmem>>, %arg8: memref<128x128xbf16, #tpu.memory_space<vmem>>, %arg9: memref<1x128xf32, #tpu.memory_space<vmem>>, %arg10: memref<8x128xf32, #tpu.memory_space<vmem>>) attributes {dimension_semantics = [#tpu.dimension_semantics<parallel>], iteration_bounds = array<i64: 1>, scalar_prefetch = 0 : i64, scratch_operands = 0 : i64, tpu.core_type = #tpu.core_type<tc>, window_params = [{transform_indices = @transform_0, window_bounds = array<i64: 8, 784>}, {pipeline_mode = #tpu.pipeline_mode<synchronous>, transform_indices = @transform_1, window_bounds = array<i64: 784, 512>}, {pipeline_mode = #tpu.pipeline_mode<synchronous>, transform_indices = @transform_2, window_bounds = array<i64: 1, 512>}, {pipeline_mode = #tpu.pipeline_mode<synchronous>, transform_indices = @transform_3, window_bounds = array<i64: 512, 256>}, {pipeline_mode = #tpu.pipeline_mode<synchronous>, transform_indices = @transform_4, window_bounds = array<i64: 1, 256>}, {pipeline_mode = #tpu.pipeline_mode<synchronous>, transform_indices = @transform_5, window_bounds = array<i64: 256, 128>}, {pipeline_mode = #tpu.pipeline_mode<synchronous>, transform_indices = @transform_6, window_bounds = array<i64: 1, 128>}, {pipeline_mode = #tpu.pipeline_mode<synchronous>, transform_indices = @transform_7, window_bounds = array<i64: 128, 128>}, {pipeline_mode = #tpu.pipeline_mode<synchronous>, transform_indices = @transform_8, window_bounds = array<i64: 1, 128>}, {transform_indices = @transform_9, window_bounds = array<i64: 8, 128>}]} {
    %c0 = arith.constant 0 : index
    %c0_0 = arith.constant 0 : index
    %0 = vector.load %arg1[%c0, %c0_0] : memref<8x784xbf16, #tpu.memory_space<vmem>>, vector<8x784xbf16>
    %c0_1 = arith.constant 0 : index
    %c0_2 = arith.constant 0 : index
    %1 = vector.load %arg2[%c0_1, %c0_2] : memref<784x512xbf16, #tpu.memory_space<vmem>>, vector<784x512xbf16>
    %cst = arith.constant dense<0.000000e+00> : vector<8x512xf32>
    %2 = tpu.matmul %0, %1, %cst {dimension_numbers = #tpu.dot_dimension_numbers<[1], [0], [0], [1], [0, 0, 1, 1], [], []>} : vector<8x784xbf16>, vector<784x512xbf16>, vector<8x512xf32> -> vector<8x512xf32>
    %c0_3 = arith.constant 0 : index
    %c0_4 = arith.constant 0 : index
    %3 = vector.load %arg3[%c0_3, %c0_4] : memref<1x512xf32, #tpu.memory_space<vmem>>, vector<1x512xf32>
    %4 = vector.broadcast %3 : vector<1x512xf32> to vector<8x512xf32>
    %5 = arith.addf %2, %4 : vector<8x512xf32>
    %cst_5 = arith.constant 0.000000e+00 : f32
    %6 = vector.broadcast %cst_5 : f32 to vector<8x512xf32>
    %7 = arith.maximumf %5, %6 : vector<8x512xf32>
    %8 = arith.truncf %7 : vector<8x512xf32> to vector<8x512xbf16>
    %c0_6 = arith.constant 0 : index
    %c0_7 = arith.constant 0 : index
    %9 = vector.load %arg4[%c0_6, %c0_7] : memref<512x256xbf16, #tpu.memory_space<vmem>>, vector<512x256xbf16>
    %cst_8 = arith.constant dense<0.000000e+00> : vector<8x256xf32>
    %10 = tpu.matmul %8, %9, %cst_8 {dimension_numbers = #tpu.dot_dimension_numbers<[1], [0], [0], [1], [0, 0, 1, 1], [], []>} : vector<8x512xbf16>, vector<512x256xbf16>, vector<8x256xf32> -> vector<8x256xf32>
    %c0_9 = arith.constant 0 : index
    %c0_10 = arith.constant 0 : index
    %11 = vector.load %arg5[%c0_9, %c0_10] : memref<1x256xf32, #tpu.memory_space<vmem>>, vector<1x256xf32>
    %12 = vector.broadcast %11 : vector<1x256xf32> to vector<8x256xf32>
    %13 = arith.addf %10, %12 : vector<8x256xf32>
    %cst_11 = arith.constant 0.000000e+00 : f32
    %14 = vector.broadcast %cst_11 : f32 to vector<8x256xf32>
    %15 = arith.maximumf %13, %14 : vector<8x256xf32>
    %16 = arith.truncf %15 : vector<8x256xf32> to vector<8x256xbf16>
    %c0_12 = arith.constant 0 : index
    %c0_13 = arith.constant 0 : index
    %17 = vector.load %arg6[%c0_12, %c0_13] : memref<256x128xbf16, #tpu.memory_space<vmem>>, vector<256x128xbf16>
    %cst_14 = arith.constant dense<0.000000e+00> : vector<8x128xf32>
    %18 = tpu.matmul %16, %17, %cst_14 {dimension_numbers = #tpu.dot_dimension_numbers<[1], [0], [0], [1], [0, 0, 1, 1], [], []>} : vector<8x256xbf16>, vector<256x128xbf16>, vector<8x128xf32> -> vector<8x128xf32>
    %c0_15 = arith.constant 0 : index
    %c0_16 = arith.constant 0 : index
    %19 = vector.load %arg7[%c0_15, %c0_16] : memref<1x128xf32, #tpu.memory_space<vmem>>, vector<1x128xf32>
    %20 = vector.broadcast %19 : vector<1x128xf32> to vector<8x128xf32>
    %21 = arith.addf %18, %20 : vector<8x128xf32>
    %cst_17 = arith.constant 0.000000e+00 : f32
    %22 = vector.broadcast %cst_17 : f32 to vector<8x128xf32>
    %23 = arith.maximumf %21, %22 : vector<8x128xf32>
    %24 = arith.truncf %23 : vector<8x128xf32> to vector<8x128xbf16>
    %c0_18 = arith.constant 0 : index
    %c0_19 = arith.constant 0 : index
    %25 = vector.load %arg8[%c0_18, %c0_19] : memref<128x128xbf16, #tpu.memory_space<vmem>>, vector<128x128xbf16>
    %cst_20 = arith.constant dense<0.000000e+00> : vector<8x128xf32>
    %26 = tpu.matmul %24, %25, %cst_20 {dimension_numbers = #tpu.dot_dimension_numbers<[1], [0], [0], [1], [0, 0, 1, 1], [], []>} : vector<8x128xbf16>, vector<128x128xbf16>, vector<8x128xf32> -> vector<8x128xf32>
    %c0_21 = arith.constant 0 : index
    %c0_22 = arith.constant 0 : index
    %27 = vector.load %arg9[%c0_21, %c0_22] : memref<1x128xf32, #tpu.memory_space<vmem>>, vector<1x128xf32>
    %28 = vector.broadcast %27 : vector<1x128xf32> to vector<8x128xf32>
    %29 = arith.addf %26, %28 : vector<8x128xf32>
    %cst_23 = arith.constant dense<0xFF800000> : vector<8xf32>
    %30 = vector.multi_reduction <maximumf>, %29, %cst_23 [1] : vector<8x128xf32> to vector<8xf32>
    %31 = vector.shape_cast %30 : vector<8xf32> to vector<8x1xf32>
    %32 = vector.broadcast %31 : vector<8x1xf32> to vector<8x128xf32>
    %33 = arith.subf %29, %32 : vector<8x128xf32>
    %34 = math.exp %33 : vector<8x128xf32>
    %cst_24 = arith.constant dense<0.000000e+00> : vector<8xf32>
    %35 = vector.multi_reduction <add>, %34, %cst_24 [1] : vector<8x128xf32> to vector<8xf32>
    %36 = vector.shape_cast %35 : vector<8xf32> to vector<8x1xf32>
    %37 = math.log %36 : vector<8x1xf32>
    %38 = vector.broadcast %37 : vector<8x1xf32> to vector<8x128xf32>
    %39 = arith.subf %33, %38 : vector<8x128xf32>
    %c0_25 = arith.constant 0 : index
    %c0_26 = arith.constant 0 : index
    %40 = vector.load %arg10[%c0_25, %c0_26] : memref<8x128xf32, #tpu.memory_space<vmem>>, vector<8x128xf32>
    tpu.vector_store %arg10[%c0_25, %c0_26], %39 {strides = array<i32>} : memref<8x128xf32, #tpu.memory_space<vmem>>, vector<8x128xf32>,
    return
  }
  func.func @transform_0(%arg0: i32) -> (i32, i32) {
    %c0_i32 = arith.constant 0 : i32
    %c0_i32_0 = arith.constant 0 : i32
    return %arg0, %c0_i32 : i32, i32
  }
  func.func @transform_1(%arg0: i32) -> (i32, i32) {
    %c0_i32 = arith.constant 0 : i32
    %c0_i32_0 = arith.constant 0 : i32
    %c0_i32_1 = arith.constant 0 : i32
    return %c0_i32, %c0_i32_0 : i32, i32
  }
  func.func @transform_2(%arg0: i32) -> (i32, i32) {
    %c0_i32 = arith.constant 0 : i32
    %c0_i32_0 = arith.constant 0 : i32
    %c0_i32_1 = arith.constant 0 : i32
    return %c0_i32, %c0_i32_0 : i32, i32
  }
  func.func @transform_3(%arg0: i32) -> (i32, i32) {
    %c0_i32 = arith.constant 0 : i32
    %c0_i32_0 = arith.constant 0 : i32
    %c0_i32_1 = arith.constant 0 : i32
    return %c0_i32, %c0_i32_0 : i32, i32
  }
  func.func @transform_4(%arg0: i32) -> (i32, i32) {
    %c0_i32 = arith.constant 0 : i32
    %c0_i32_0 = arith.constant 0 : i32
    %c0_i32_1 = arith.constant 0 : i32
    return %c0_i32, %c0_i32_0 : i32, i32
  }
  func.func @transform_5(%arg0: i32) -> (i32, i32) {
    %c0_i32 = arith.constant 0 : i32
    %c0_i32_0 = arith.constant 0 : i32
    %c0_i32_1 = arith.constant 0 : i32
    return %c0_i32, %c0_i32_0 : i32, i32
  }
  func.func @transform_6(%arg0: i32) -> (i32, i32) {
    %c0_i32 = arith.constant 0 : i32
    %c0_i32_0 = arith.constant 0 : i32
    %c0_i32_1 = arith.constant 0 : i32
    return %c0_i32, %c0_i32_0 : i32, i32
  }
  func.func @transform_7(%arg0: i32) -> (i32, i32) {
    %c0_i32 = arith.constant 0 : i32
    %c0_i32_0 = arith.constant 0 : i32
    %c0_i32_1 = arith.constant 0 : i32
    return %c0_i32, %c0_i32_0 : i32, i32
  }
  func.func @transform_8(%arg0: i32) -> (i32, i32) {
    %c0_i32 = arith.constant 0 : i32
    %c0_i32_0 = arith.constant 0 : i32
    %c0_i32_1 = arith.constant 0 : i32
    return %c0_i32, %c0_i32_0 : i32, i32
  }
  func.func @transform_9(%arg0: i32) -> (i32, i32) {
    %c0_i32 = arith.constant 0 : i32
    %c0_i32_0 = arith.constant 0 : i32
    return %arg0, %c0_i32 : i32, i32
  }
}

</mosaic_0001>

<bundles_post_ra>
// kernel: tpu_custom_call.1
= control target key start
LH: loop header
LB: loop body
LE: loop exit
PB: predicated region body
PF: predicated region fallthrough
CT: control target
= control target key end

     0   :  { %14 = vsyncpa [#allocation3], 0  ;;  %s3562_s0 = inlined_call_operand.hbm [shape: bf16[8,784], index: 0, kind: input, shape index: {}]   ;;  %s3563_s1 = inlined_call_operand.hbm [shape: bf16[784,512], index: 1, kind: input, shape index: {}]   ;;  %s3564_s2 = inlined_call_operand.hbm [shape: f32[1,512], index: 2, kind: input, shape index: {}]   ;;  %s3565_s3 = inlined_call_operand.hbm [shape: bf16[512,256], index: 3, kind: input, shape index: {}]   ;;  %s3566_s4 = inlined_call_operand.vmem [shape: f32[1,256], index: 4, kind: input, shape index: {}]   ;;  %s3567_s5 = inlined_call_operand.hbm [shape: bf16[256,128], index: 5, kind: input, shape index: {}]   ;;  %s3568_s6 = inlined_call_operand.vmem [shape: f32[1,128], index: 6, kind: input, shape index: {}]   ;;  %s3569_s7 = inlined_call_operand.hbm [shape: bf16[128,128], index: 7, kind: input, shape index: {}]   ;;  %s3570_s8 = inlined_call_operand.vmem [shape: f32[1,128], index: 8, kind: input, shape index: {}]   ;;  %s3571_s9 = inlined_call_operand.hbm [shape: f32[8,128], index: 9, kind: output, shape index: {}]  }
   0x1   :  { %15 = vsyncpa [#allocation6], 0 }
   0x2   :  { %16 = vsyncpa [#allocation9], 0 }
   0x3   :  { %17 = vsyncpa [#allocation12], 0 }
   0x4   :  { %18 = vsyncpa [#allocation4], 0  ;;  %s3414_s30 = smov [#allocation5]  }
   0x5   :  { %s34_s10 = sshll.u32 %s3414_s30, 4  ;;  %s35_s10 = int_to_ptr.vmem [resolvable:$true] %s34_s10 }
   0x6   :  { %s3272_s11 = scalar_lea.vmem %s35_s10, 25088  ;;  %p3277_p1 = scmp.lt.s32.totalorder %s35_s10, %s35_s10 }
   0x7   :  { %p3273_p0 = scmp.ne.s32.totalorder %s35_s10, %s3272_s11  ;;  %p3278_p2 = scmp.lt.s32.totalorder %s3272_s11, %s3272_s11 }
   0x9   :  { %p3279_p3 = por %p3278_p2, %p3277_p1 }
   0xb   :  { %p3280_p4 = pnand %p3279_p3, %p3273_p0 }
   0xd   :  { %3283 = shalt.err (!%p3280_p4)
}
   0xe   :  { %s3415_s12 = smov 256   ;;  %s3416_s13 = smov 16  }
   0xf   :  { %40 = dma.hbm_to_vmem [thread:$0]  %s3563_s1, 25088, %s35_s10, [#allocation6], %s3415_s12, %s3415_s12, %s3416_s13  }
  0x10   :  { %s3417_s16 = smov [#allocation8]  }
  0x11   :  { %s56_s17 = sshll.u32 %s3417_s16, 4  ;;  %s57_s17 = int_to_ptr.vmem [resolvable:$true] %s56_s17 }
  0x12   :  { %s3292_s18 = scalar_lea.vmem %s57_s17, 8192  ;;  %p3297_p6 = scmp.lt.s32.totalorder %s57_s17, %s57_s17 }
  0x13   :  { %p3293_p5 = scmp.ne.s32.totalorder %s57_s17, %s3292_s18  ;;  %p3298_p7 = scmp.lt.s32.totalorder %s3292_s18, %s3292_s18 }
  0x15   :  { %p3299_p8 = por %p3298_p7, %p3297_p6 }
  0x17   :  { %p3300_p9 = pnand %p3299_p8, %p3293_p5 }
  0x19   :  { %3303 = shalt.err (!%p3300_p9)
}
  0x1a   :  { %s3418_s19 = smov 128   ;;  %s3419_s20 = smov 8  }
  0x1b   :  { %62 = dma.hbm_to_vmem [thread:$0]  %s3565_s3, 8192, %s57_s17, [#allocation9], %s3418_s19, %s3418_s19, %s3419_s20  }
  0x1c   :  { %s3420_s23 = smov [#allocation2]   ;;  %s3421_s25 = smov [#allocation7]  }
  0x1d   :  { %s25_s24 = sshll.u32 %s3420_s23, 4  ;;  %s47_s1 = sshll.u32 %s3421_s25, 4  ;;  %s26_s24 = int_to_ptr.vmem [resolvable:$true] %s25_s24  ;;  %s48_s1 = int_to_ptr.vmem [resolvable:$true] %s47_s1 }
  0x1e   :  { %s3312_s26 = scalar_lea.vmem %s26_s24, 448  ;;  %p3317_p11 = scmp.lt.s32.totalorder %s26_s24, %s26_s24 }
  0x1f   :  { %p3313_p10 = scmp.ne.s32.totalorder %s26_s24, %s3312_s26  ;;  %p3318_p12 = scmp.lt.s32.totalorder %s3312_s26, %s3312_s26 }
  0x21   :  { %p3319_p13 = por %p3318_p12, %p3317_p11 }
  0x23   :  { %p3320_p0 = pnand %p3319_p13, %p3313_p10 }
  0x25   :  { %3323 = shalt.err (!%p3320_p0)
}
  0x26   :  { %28 = dma.hbm_to_vmem [thread:$0]  %s3562_s0, 448, %s26_s24, [#allocation3]  }
  0x27   :  { %s3332_s29 = scalar_lea.vmem %s48_s1, 64  ;;  %p3337_p2 = scmp.lt.s32.totalorder %s48_s1, %s48_s1 }
  0x28   :  { %p3333_p1 = scmp.ne.s32.totalorder %s48_s1, %s3332_s29  ;;  %p3338_p3 = scmp.lt.s32.totalorder %s3332_s29, %s3332_s29 }
  0x2a   :  { %p3339_p4 = por %p3338_p3, %p3337_p2 }
  0x2c   :  { %p3340_p5 = pnand %p3339_p4, %p3333_p1 }
  0x2e   :  { %3343 = shalt.err (!%p3340_p5)
}
  0x2f   :  { %50 = dma.hbm_to_vmem [thread:$0]  %s3564_s2, 64, %s48_s1, [#allocation6]  }
  0x30   :  { %s3422_s10 = smov [#allocation10]  }
  0x31   :  { %s70_s11 = sshll.u32 %s3422_s10, 4  ;;  %s71_s11 = int_to_ptr.vmem [resolvable:$true] %s70_s11 }
  0x32   :  { %s3352_s12 = scalar_lea.vmem %s71_s11, 2048  ;;  %p3357_p7 = scmp.lt.s32.totalorder %s71_s11, %s71_s11 }
  0x33   :  { %p3353_p6 = scmp.ne.s32.totalorder %s71_s11, %s3352_s12  ;;  %p3358_p8 = scmp.lt.s32.totalorder %s3352_s12, %s3352_s12 }
  0x35   :  { %p3359_p9 = por %p3358_p8, %p3357_p7 }
  0x37   :  { %p3360_p10 = pnand %p3359_p9, %p3353_p6 }
  0x39   :  { %3363 = shalt.err (!%p3360_p10)
}
  0x3a   :  { %s3423_s0 = smov 64   ;;  %s3424_s13 = smov 4  }
  0x3b   :  { %76 = dma.hbm_to_vmem [thread:$0]  %s3567_s5, 2048, %s71_s11, [#allocation9], %s3423_s0, %s3423_s0, %s3424_s13  }
  0x3c   :  { %s3425_s16 = smov [#allocation11]  }
  0x3d   :  { %s84_s17 = sshll.u32 %s3425_s16, 4  ;;  %s85_s17 = int_to_ptr.vmem [resolvable:$true] %s84_s17 }
  0x3e   :  { %s3372_s2 = scalar_lea.vmem %s85_s17, 1024  ;;  %p3377_p12 = scmp.lt.s32.totalorder %s85_s17, %s85_s17 }
  0x3f   :  { %p3373_p11 = scmp.ne.s32.totalorder %s85_s17, %s3372_s2  ;;  %p3378_p13 = scmp.lt.s32.totalorder %s3372_s2, %s3372_s2 }
  0x41   :  { %p3379_p0 = por %p3378_p13, %p3377_p12 }
  0x43   :  { %p3380_p1 = pnand %p3379_p0, %p3373_p11 }
  0x45   :  { %3383 = shalt.err (!%p3380_p1)
}
  0x46   :  { %90 = dma.hbm_to_vmem [thread:$0]  %s3569_s7, 1024, %s85_s17, [#allocation12], %s3423_s0, %s3423_s0, %s3424_s13  }
  0x47   :  { %3404 = dma.done.wait [#allocation3], 448  }
  0x48   :  { %3405 = vsyncadd [#allocation3], 4294966848 }
  0x49   :  { %3406 = dma.done.wait [#allocation6], 25152  }
  0x4a   :  { %3407 = vsyncadd [#allocation6], 4294942144 }
  0x4b   :  { %3408 = dma.done.wait [#allocation9], 10240  }
  0x4c   :  { %3409 = vsyncadd [#allocation9], 4294957056 }
  0x4d   :  { %3410 = dma.done.wait [#allocation12], 1024  }
  0x4e   :  { %3411 = vsyncadd [#allocation12], 4294966272  ;;  %v2839_v0 = vld [vmem:[#allocation5 + $0xe4] ss:$16 sps:$4 sm:$0xff]   ;;  %v2843_v2 = vld [vmem:[#allocation5 + $0xe0] ss:$16 sps:$4 sm:$0xff]  }
  0x4f   :  { %v2841_v1 = vld [vmem:[#allocation5 + $0x2e4] ss:$16 sps:$4 sm:$0xff]   ;;  %1342 = vmatprep.subr.bf16.mxu0 %v2839_v0  ;;  %v2844_v3 = vld [vmem:[#allocation5 + $0x2e0] ss:$16 sps:$4 sm:$0xff]   ;;  %vm1338_vm0 = vcmask 130048   ;;  %vm3428_vm1 = vmmov 0  }
  0x50   :  { %1383 = vmatprep.subr.bf16.mxu1 %v2841_v1  ;;  %v2845_v4 = vld [vmem:[#allocation5 + $0xc4] ss:$16 sps:$4 sm:$0xff]   ;;  %1343 = vmatpush1.bf16.msra.mxu0 %v2843_v2  ;;  %v2849_v6 = vld [vmem:[#allocation5 + $0xc0] ss:$16 sps:$4 sm:$0xff]  }
  0x51   :  { %1384 = vmatpush1.bf16.msra.mxu1 %v2844_v3  ;;  %v2847_v5 = vld [vmem:[#allocation5 + $0x2c4] ss:$16 sps:$4 sm:$0xff]   ;;  %1344 = vmatprep.subr.bf16.mxu0 %v2845_v4  ;;  %v2850_v7 = vld [vmem:[#allocation5 + $0x2c0] ss:$16 sps:$4 sm:$0xff]  }
  0x52   :  { %1385 = vmatprep.subr.bf16.mxu1 %v2847_v5  ;;  %v2851_v8 = vld [vmem:[#allocation5 + $0xa4] ss:$16 sps:$4 sm:$0xff]   ;;  %v2855_v10 = vld [vmem:[#allocation5 + $0xa0] ss:$16 sps:$4 sm:$0xff]  }
  0x53   :  { %v2853_v9 = vld [vmem:[#allocation5 + $0x2a4] ss:$16 sps:$4 sm:$0xff]   ;;  %v2856_v11 = vld [vmem:[#allocation5 + $0x2a0] ss:$16 sps:$4 sm:$0xff]  }
  0x54   :  { %1345 = vmatpush1.bf16.msra.mxu0 %v2849_v6  ;;  %v2857_v12 = vld [vmem:[#allocation5 + $0x84] ss:$16 sps:$4 sm:$0xff]   ;;  %v2861_v14 = vld [vmem:[#allocation5 + $0x80] ss:$16 sps:$4 sm:$0xff]  }
  0x55   :  { %1386 = vmatpush1.bf16.msra.mxu1 %v2850_v7  ;;  %1346 = vmatprep.subr.bf16.mxu0 %v2851_v8  ;;  %v2859_v13 = vld [vmem:[#allocation5 + $0x284] ss:$16 sps:$4 sm:$0xff]   ;;  %v2862_v15 = vld [vmem:[#allocation5 + $0x280] ss:$16 sps:$4 sm:$0xff]  }
  0x56   :  { %1387 = vmatprep.subr.bf16.mxu1 %v2853_v9  ;;  %v2863_v16 = vld [vmem:[#allocation5 + $0x64] ss:$16 sps:$4 sm:$0xff]   ;;  %v2867_v18 = vld [vmem:[#allocation5 + $0x60] ss:$16 sps:$4 sm:$0xff]  }
  0x57   :  { %v2865_v17 = vld [vmem:[#allocation5 + $0x264] ss:$16 sps:$4 sm:$0xff]   ;;  %v2868_v19 = vld [vmem:[#allocation5 + $0x260] ss:$16 sps:$4 sm:$0xff]  }
  0x58   :  { %1347 = vmatpush1.bf16.msra.mxu0 %v2855_v10  ;;  %v2869_v20 = vld [vmem:[#allocation5 + $0x44] ss:$16 sps:$4 sm:$0xff]   ;;  %v2873_v22 = vld [vmem:[#allocation5 + $0x40] ss:$16 sps:$4 sm:$0xff]  }
  0x59   :  { %1388 = vmatpush1.bf16.msra.mxu1 %v2856_v11  ;;  %1348 = vmatprep.subr.bf16.mxu0 %v2857_v12  ;;  %v2871_v21 = vld [vmem:[#allocation5 + $0x244] ss:$16 sps:$4 sm:$0xff]   ;;  %v2874_v23 = vld [vmem:[#allocation5 + $0x240] ss:$16 sps:$4 sm:$0xff]   ;;  %v2950_v11 = vld [vmem:[#allocation5 + $0xec] ss:$16 sps:$4 sm:$0xff]  }
  0x5a   :  { %1389 = vmatprep.subr.bf16.mxu1 %v2859_v13  ;;  %v2875_v24 = vld [vmem:[#allocation5 + $0x24] ss:$16 sps:$4 sm:$0xff]   ;;  %v2879_v26 = vld [vmem:[#allocation5 + $0x20] ss:$16 sps:$4 sm:$0xff]   ;;  %v3426_v13 = vmov 0  }
  0x5b   :  { %v2877_v25 = vld [vmem:[#allocation5 + $0x224] ss:$16 sps:$4 sm:$0xff]   ;;  %v2880_v27 = vld [vmem:[#allocation5 + $0x220] ss:$16 sps:$4 sm:$0xff]  }
  0x5c   :  { %1349 = vmatpush1.bf16.msra.mxu0 %v2861_v14  ;;  %v2881_v28 = vld [vmem:[#allocation5 + $0x4] ss:$16 sps:$4 sm:$0xff]   ;;  %v2885_v30 = vld [vmem:[#allocation5] ss:$16 sps:$4 sm:$0xff]  }
  0x5d   :  { %1390 = vmatpush1.bf16.msra.mxu1 %v2862_v15  ;;  %1350 = vmatprep.subr.bf16.mxu0 %v2863_v16  ;;  %v2883_v29 = vld [vmem:[#allocation5 + $0x204] ss:$16 sps:$4 sm:$0xff]   ;;  %v2886_v31 = vld [vmem:[#allocation5 + $0x200] ss:$16 sps:$4 sm:$0xff]   ;;  %v2948_v15 = vld [vmem:[#allocation5 + $0xe8] ss:$16 sps:$4 sm:$0xff]  }
  0x5e   :  { %1391 = vmatprep.subr.bf16.mxu1 %v2865_v17  ;;  %v2887_v32 = vld [vmem:[#allocation5 + $0x1e4] ss:$16 sps:$4 sm:$0xff]   ;;  %v2891_v34 = vld [vmem:[#allocation5 + $0x1e0] ss:$16 sps:$4 sm:$0xff]   ;;  %v3511_v17 = vld [vmem:[#allocation2 + $0x18] ss:$0 sps:$4 sm:$0xff]  }
  0x5f   :  { %v2889_v33 = vld [vmem:[#allocation5 + $0x3e4] ss:$16 sps:$4 sm:$0xff]   ;;  %v2892_v35 = vld [vmem:[#allocation5 + $0x3e0] ss:$16 sps:$4 sm:$0xff]  }
  0x60   :  { %1351 = vmatpush1.bf16.msra.mxu0 %v2867_v18  ;;  %v2893_v36 = vld [vmem:[#allocation5 + $0x1c4] ss:$16 sps:$4 sm:$0xff]   ;;  %v2897_v38 = vld [vmem:[#allocation5 + $0x1c0] ss:$16 sps:$4 sm:$0xff]   ;;  %v2957_v18 = vld [vmem:[#allocation5 + $0xcc] ss:$16 sps:$4 sm:$0xff]  }
  0x61   :  { %1392 = vmatpush1.bf16.msra.mxu1 %v2868_v19  ;;  %1352 = vmatprep.subr.bf16.mxu0 %v2869_v20  ;;  %v2895_v37 = vld [vmem:[#allocation5 + $0x3c4] ss:$16 sps:$4 sm:$0xff]   ;;  %v2898_v39 = vld [vmem:[#allocation5 + $0x3c0] ss:$16 sps:$4 sm:$0xff]   ;;  %v2955_v20 = vld [vmem:[#allocation5 + $0xc8] ss:$16 sps:$4 sm:$0xff]  }
  0x62   :  { %1393 = vmatprep.subr.bf16.mxu1 %v2871_v21  ;;  %v2899_v40 = vld [vmem:[#allocation5 + $0x1a4] ss:$16 sps:$4 sm:$0xff]   ;;  %v2903_v42 = vld [vmem:[#allocation5 + $0x1a0] ss:$16 sps:$4 sm:$0xff]  }
  0x63   :  { %v2901_v41 = vld [vmem:[#allocation5 + $0x3a4] ss:$16 sps:$4 sm:$0xff]   ;;  %v2904_v43 = vld [vmem:[#allocation5 + $0x3a0] ss:$16 sps:$4 sm:$0xff]  }
  0x64   :  { %1353 = vmatpush1.bf16.msra.mxu0 %v2873_v22  ;;  %v2905_v44 = vld [vmem:[#allocation5 + $0x184] ss:$16 sps:$4 sm:$0xff]   ;;  %v113_v48 = vld [vmem:[#allocation2 + $0x8] sm:$0xff] }
  0x65   :  { %1394 = vmatpush1.bf16.msra.mxu1 %v2874_v23  ;;  %1354 = vmatprep.subr.bf16.mxu0 %v2875_v24  ;;  %v2907_v45 = vld [vmem:[#allocation5 + $0x384] ss:$16 sps:$4 sm:$0xff]   ;;  %v2909_v49 = vld [vmem:[#allocation5 + $0x180] ss:$16 sps:$4 sm:$0xff]   ;;  %v3500_v51 = vcombine.high %v113_v48, %v113_v48  ;;  %v3506_v7 = vcombine.low %v113_v48, %v113_v48  ;;  %v2963_v22 = vld [vmem:[#allocation5 + $0xac] ss:$16 sps:$4 sm:$0xff]  }
  0x66   :  { %1395 = vmatprep.subr.bf16.mxu1 %v2877_v25  ;;  %v112_v46 = vld [vmem:[#allocation2] sm:$0xff]  ;;  %v2910_v50 = vld [vmem:[#allocation5 + $0x380] ss:$16 sps:$4 sm:$0xff]   ;;  %v2999_v48 = vld [vmem:[#allocation5 + $0x1ec] ss:$16 sps:$4 sm:$0xff]  }
  0x67   :  { %v3498_v47 = vcombine.high %v112_v46, %v112_v46  ;;  %v2911_v52 = vld [vmem:[#allocation5 + $0x164] ss:$16 sps:$4 sm:$0xff]   ;;  %1415 = vmatprep.mubr.bf16.mxu1 %v3500_v51  ;;  %v2915_v54 = vld [vmem:[#allocation5 + $0x160] ss:$16 sps:$4 sm:$0xff]   ;;  %v3504_v6 = vcombine.low %v112_v46, %v112_v46  ;;  %v2961_v24 = vld [vmem:[#allocation5 + $0xa8] ss:$16 sps:$4 sm:$0xff]  }
  0x68   :  { %1355 = vmatpush1.bf16.msra.mxu0 %v2879_v26  ;;  %v2913_v53 = vld [vmem:[#allocation5 + $0x364] ss:$16 sps:$4 sm:$0xff]   ;;  %v2916_v55 = vld [vmem:[#allocation5 + $0x360] ss:$16 sps:$4 sm:$0xff]   ;;  %v2969_v26 = vld [vmem:[#allocation5 + $0x8c] ss:$16 sps:$4 sm:$0xff]  }
  0x69   :  { %1396 = vmatpush1.bf16.msra.mxu1 %v2880_v27  ;;  %1356 = vmatprep.subr.bf16.mxu0 %v2881_v28  ;;  %v2917_v56 = vld [vmem:[#allocation5 + $0x144] ss:$16 sps:$4 sm:$0xff]   ;;  %v2921_v58 = vld [vmem:[#allocation5 + $0x140] ss:$16 sps:$4 sm:$0xff]   ;;  %v2967_v28 = vld [vmem:[#allocation5 + $0x88] ss:$16 sps:$4 sm:$0xff]  }
  0x6a   :  { %1397 = vmatprep.subr.bf16.mxu1 %v2883_v29  ;;  %1374 = vmatprep.mubr.bf16.mxu0 %v3498_v47  ;;  %v2919_v57 = vld [vmem:[#allocation5 + $0x344] ss:$16 sps:$4 sm:$0xff]   ;;  %v2922_v59 = vld [vmem:[#allocation5 + $0x340] ss:$16 sps:$4 sm:$0xff]   ;;  %v2991_v46 = vld [vmem:[#allocation5 + $0x8] ss:$16 sps:$4 sm:$0xff]  }
  0x6b   :  { %v2923_v60 = vld [vmem:[#allocation5 + $0x124] ss:$16 sps:$4 sm:$0xff]   ;;  %v2927_v62 = vld [vmem:[#allocation5 + $0x120] ss:$16 sps:$4 sm:$0xff]  }
  0x6c   :  { %1357 = vmatpush1.bf16.msra.mxu0 %v2885_v30  ;;  %v2925_v61 = vld [vmem:[#allocation5 + $0x324] ss:$16 sps:$4 sm:$0xff]   ;;  %v2928_v63 = vld [vmem:[#allocation5 + $0x320] ss:$16 sps:$4 sm:$0xff]   ;;  %v2975_v30 = vld [vmem:[#allocation5 + $0x6c] ss:$16 sps:$4 sm:$0xff]  }
  0x6d   :  { %1398 = vmatpush1.bf16.msra.mxu1 %v2886_v31  ;;  %1358 = vmatprep.subr.bf16.mxu0 %v2887_v32  ;;  %v2929_v0 = vld [vmem:[#allocation5 + $0x104] ss:$16 sps:$4 sm:$0xff]   ;;  %v2933_v2 = vld [vmem:[#allocation5 + $0x100] ss:$16 sps:$4 sm:$0xff]  }
  0x6e   :  { %1399 = vmatprep.subr.bf16.mxu1 %v2889_v33  ;;  %v2931_v1 = vld [vmem:[#allocation5 + $0x304] ss:$16 sps:$4 sm:$0xff]   ;;  %v2934_v3 = vld [vmem:[#allocation5 + $0x300] ss:$16 sps:$4 sm:$0xff]  }
  0x6f   :  { %v2941_v4 = vld [vmem:[#allocation5 + $0x4e4] ss:$16 sps:$4 sm:$0xff]   ;;  %v2939_v8 = vld [vmem:[#allocation5 + $0x4e0] ss:$16 sps:$4 sm:$0xff]  }
  0x70   :  { %1359 = vmatpush2.bf16.msra.mxu0 %v2891_v34  ;;  %v2944_v5 = vld [vmem:[#allocation5 + $0x604] ss:$16 sps:$4 sm:$0xff]   ;;  %v2942_v9 = vld [vmem:[#allocation5 + $0x600] ss:$16 sps:$4 sm:$0xff]   ;;  %v2973_v34 = vld [vmem:[#allocation5 + $0x68] ss:$16 sps:$4 sm:$0xff]  }
  0x71   :  { %1400 = vmatpush2.bf16.msra.mxu1 %v2892_v35  ;;  %1360 = vmatprep.subr.bf16.mxu0 %v2893_v36  ;;  %v2947_v10 = vld [vmem:[#allocation5 + $0x4c4] ss:$16 sps:$4 sm:$0xff]   ;;  %v2945_v12 = vld [vmem:[#allocation5 + $0x4c0] ss:$16 sps:$4 sm:$0xff]   ;;  %v2981_v36 = vld [vmem:[#allocation5 + $0x4c] ss:$16 sps:$4 sm:$0xff]  }
  0x72   :  { %1401 = vmatprep.subr.bf16.mxu1 %v2895_v37  ;;  %v2953_v14 = vld [vmem:[#allocation5 + $0x4a4] ss:$16 sps:$4 sm:$0xff]   ;;  %v2951_v16 = vld [vmem:[#allocation5 + $0x4a0] ss:$16 sps:$4 sm:$0xff]  }
  0x73   :  { %v2960_v19 = vld [vmem:[#allocation5 + $0x484] ss:$16 sps:$4 sm:$0xff]   ;;  %v2958_v21 = vld [vmem:[#allocation5 + $0x480] ss:$16 sps:$4 sm:$0xff]  }
  0x74   :  { %1361 = vmatpush2.bf16.msra.mxu0 %v2897_v38  ;;  %v2966_v23 = vld [vmem:[#allocation5 + $0x464] ss:$16 sps:$4 sm:$0xff]   ;;  %v2964_v25 = vld [vmem:[#allocation5 + $0x460] ss:$16 sps:$4 sm:$0xff]   ;;  %v2979_v38 = vld [vmem:[#allocation5 + $0x48] ss:$16 sps:$4 sm:$0xff]  }
  0x75   :  { %1402 = vmatpush2.bf16.msra.mxu1 %v2898_v39  ;;  %1362 = vmatprep.subr.bf16.mxu0 %v2899_v40  ;;  %v2972_v27 = vld [vmem:[#allocation5 + $0x444] ss:$16 sps:$4 sm:$0xff]   ;;  %v2970_v29 = vld [vmem:[#allocation5 + $0x440] ss:$16 sps:$4 sm:$0xff]   ;;  %v2987_v40 = vld [vmem:[#allocation5 + $0x2c] ss:$16 sps:$4 sm:$0xff]  }
  0x76   :  { %1403 = vmatprep.subr.bf16.mxu1 %v2901_v41  ;;  %v2978_v31 = vld [vmem:[#allocation5 + $0x424] ss:$16 sps:$4 sm:$0xff]   ;;  %v2976_v35 = vld [vmem:[#allocation5 + $0x420] ss:$16 sps:$4 sm:$0xff]  }
  0x77   :  { %v3516_v32 = vld [vmem:[#allocation2 + $0x10] sm:$0xff]  ;;  %v2982_v39 = vld [vmem:[#allocation5 + $0x400] ss:$16 sps:$4 sm:$0xff]  }
  0x78   :  { %1363 = vmatpush2.bf16.msra.mxu0 %v2903_v42  ;;  %v3520_v33 = vcombine.high %v3516_v32, %v3516_v32  ;;  %v2984_v37 = vld [vmem:[#allocation5 + $0x404] ss:$16 sps:$4 sm:$0xff]   ;;  %v2985_v42 = vld [vmem:[#allocation5 + $0x28] ss:$16 sps:$4 sm:$0xff]  }
  0x79   :  { %1404 = vmatpush2.bf16.msra.mxu1 %v2904_v43  ;;  %1364 = vmatprep.subr.bf16.mxu0 %v2905_v44  ;;  %v2990_v41 = vld [vmem:[#allocation5 + $0x5e4] ss:$16 sps:$4 sm:$0xff]   ;;  %v2988_v43 = vld [vmem:[#allocation5 + $0x5e0] ss:$16 sps:$4 sm:$0xff]   ;;  %v2993_v44 = vld [vmem:[#allocation5 + $0xc] ss:$16 sps:$4 sm:$0xff]  }
  0x7a   :  { %1405 = vmatprep.subr.bf16.mxu1 %v2907_v45  ;;  %v2996_v45 = vld [vmem:[#allocation5 + $0x5c4] ss:$16 sps:$4 sm:$0xff]  }
  0x7c   :  { %1365 = vmatpush2.bf16.msra.mxu0 %v2909_v49  ;;  %v3002_v49 = vld [vmem:[#allocation5 + $0x5a4] ss:$16 sps:$4 sm:$0xff]  }
  0x7d   :  { %1406 = vmatpush2.bf16.msra.mxu1 %v2910_v50  ;;  %1366 = vmatprep.subr.bf16.mxu0 %v2911_v52  ;;  %v2997_v50 = vld [vmem:[#allocation5 + $0x1e8] ss:$16 sps:$4 sm:$0xff]   ;;  %v3000_v52 = vld [vmem:[#allocation5 + $0x5a0] ss:$16 sps:$4 sm:$0xff]  }
  0x7e   :  { %1407 = vmatprep.subr.bf16.mxu1 %v2913_v53  ;;  %v3005_v53 = vld [vmem:[#allocation5 + $0x1cc] ss:$16 sps:$4 sm:$0xff]  }
  0x80   :  { %1367 = vmatpush2.bf16.msra.mxu0 %v2915_v54  ;;  %v3008_v54 = vld [vmem:[#allocation5 + $0x584] ss:$16 sps:$4 sm:$0xff]  }
  0x81   :  { %1408 = vmatpush2.bf16.msra.mxu1 %v2916_v55  ;;  %1368 = vmatprep.subr.bf16.mxu0 %v2917_v56  ;;  %v3003_v55 = vld [vmem:[#allocation5 + $0x1c8] ss:$16 sps:$4 sm:$0xff]   ;;  %v3006_v56 = vld [vmem:[#allocation5 + $0x580] ss:$16 sps:$4 sm:$0xff]  }
  0x82   :  { %1409 = vmatprep.subr.bf16.mxu1 %v2919_v57  ;;  %v3011_v57 = vld [vmem:[#allocation5 + $0x1ac] ss:$16 sps:$4 sm:$0xff]  }
  0x84   :  { %1369 = vmatpush2.bf16.msra.mxu0 %v2921_v58  ;;  %v3014_v58 = vld [vmem:[#allocation5 + $0x564] ss:$16 sps:$4 sm:$0xff]  }
  0x85   :  { %1410 = vmatpush2.bf16.msra.mxu1 %v2922_v59  ;;  %1370 = vmatprep.subr.bf16.mxu0 %v2923_v60  ;;  %v3009_v59 = vld [vmem:[#allocation5 + $0x1a8] ss:$16 sps:$4 sm:$0xff]   ;;  %v3012_v60 = vld [vmem:[#allocation5 + $0x560] ss:$16 sps:$4 sm:$0xff]  }
  0x86   :  { %1411 = vmatprep.subr.bf16.mxu1 %v2925_v61  ;;  %v3017_v61 = vld [vmem:[#allocation5 + $0x18c] ss:$16 sps:$4 sm:$0xff]  }
  0x88   :  { %1371 = vmatpush2.bf16.msra.mxu0 %v2927_v62  ;;  %v3020_v62 = vld [vmem:[#allocation5 + $0x544] ss:$16 sps:$4 sm:$0xff]  }
  0x89   :  { %1412 = vmatpush2.bf16.msra.mxu1 %v2928_v63  ;;  %1372 = vmatprep.subr.bf16.mxu0 %v2929_v0  ;;  %v3015_v63 = vld [vmem:[#allocation5 + $0x188] ss:$16 sps:$4 sm:$0xff]   ;;  %v3018_v0 = vld [vmem:[#allocation5 + $0x540] ss:$16 sps:$4 sm:$0xff]  }
  0x8a   :  { %1413 = vmatprep.subr.bf16.mxu1 %v2931_v1  ;;  %v3023_v1 = vld [vmem:[#allocation5 + $0x16c] ss:$16 sps:$4 sm:$0xff]  }
  0x8c   :  { %1373 = vmatpush2.bf16.msra.mxu0 %v2933_v2  ;;  %v3026_v2 = vld [vmem:[#allocation5 + $0x524] ss:$16 sps:$4 sm:$0xff]  }
  0x8d   :  { %1414 = vmatpush2.bf16.msra.mxu1 %v2934_v3  ;;  %1424 = vmatprep.subr.bf16.mxu0 %v2941_v4  ;;  %v3021_v3 = vld [vmem:[#allocation5 + $0x168] ss:$16 sps:$4 sm:$0xff]   ;;  %v3024_v4 = vld [vmem:[#allocation5 + $0x520] ss:$16 sps:$4 sm:$0xff]  }
  0x8e   :  { %1479 = vmatprep.subr.bf16.mxu1 %v2944_v5  ;;  %v3029_v5 = vld [vmem:[#allocation5 + $0x14c] ss:$16 sps:$4 sm:$0xff]  }
  0x8f   :  { %1375 = vmatmul.mubr.bf16.vlgmr.msra.gmra.mxu0 %v3504_v6 }
  0x90   :  { %1416 = vmatmul.mubr.bf16.vlgmr.msra.gmra.mxu1 %v3506_v7  ;;  %1425 = vmatpush1.bf16.msra.mxu0 %v2939_v8  ;;  %v3032_v8 = vld [vmem:[#allocation5 + $0x504] ss:$16 sps:$4 sm:$0xff]  }
  0x91   :  { %1480 = vmatpush1.bf16.msra.mxu1 %v2942_v9  ;;  %1426 = vmatprep.subr.bf16.mxu0 %v2947_v10  ;;  %v3027_v9 = vld [vmem:[#allocation5 + $0x148] ss:$16 sps:$4 sm:$0xff]   ;;  %v3030_v10 = vld [vmem:[#allocation5 + $0x500] ss:$16 sps:$4 sm:$0xff]  }
  0x92   :  { %1497 = vmatprep.mubr.bf16.mxu1 %v3426_v13  ;;  %1506 = vmatprep.subr.bf16.mxu1 %v2950_v11  ;;  %v3037_v11 = vld [vmem:[#allocation5 + $0x12c] ss:$16 sps:$4 sm:$0xff]  }
  0x93   :  { %1456 = vmatprep.mubr.bf16.mxu0 %v3520_v33 }
  0x94   :  { %1427 = vmatpush1.bf16.msra.mxu0 %v2945_v12  ;;  %v3040_v12 = vld [vmem:[#allocation5 + $0x2ec] ss:$16 sps:$4 sm:$0xff]  }
  0x95   :  { %1428 = vmatprep.subr.bf16.mxu0 %v2953_v14  ;;  %v3525_v14 = vcombine.low %v3516_v32, %v3516_v32  ;;  %v3059_v32 = vld [vmem:[#allocation5 + $0x4a8] ss:$16 sps:$4 sm:$0xff]  }
  0x98   :  { %2680 = vmatmul.mubr.msk.bf16.vlgmr.msra.gmra.mxu1 %vm1338_vm0, %v3511_v17  ;;  %1429 = vmatpush1.bf16.msra.mxu0 %v2951_v16  ;;  %v3038_v16 = vld [vmem:[#allocation5 + $0x2e8] ss:$16 sps:$4 sm:$0xff]  }
  0x99   :  { %1507 = vmatpush1.bf16.msra.mxu1 %v2948_v15  ;;  %1430 = vmatprep.subr.bf16.mxu0 %v2960_v19  ;;  %v3035_v15 = vld [vmem:[#allocation5 + $0x128] ss:$16 sps:$4 sm:$0xff]   ;;  %v3046_v19 = vld [vmem:[#allocation5 + $0x2cc] ss:$16 sps:$4 sm:$0xff]  }
  0x9a   :  { %1508 = vmatprep.subr.bf16.mxu1 %v2957_v18  ;;  %1538 = vmatprep.mubr.bf16.mxu1 %v3498_v47  ;;  %v2994_v47 = vld [vmem:[#allocation5 + $0x5c0] ss:$16 sps:$4 sm:$0xff]   ;;  %v3043_v18 = vld [vmem:[#allocation5 + $0x10c] ss:$16 sps:$4 sm:$0xff]  }
  0x9c   :  { %1431 = vmatpush1.bf16.msra.mxu0 %v2958_v21  ;;  %v3044_v21 = vld [vmem:[#allocation5 + $0x2c8] ss:$16 sps:$4 sm:$0xff]  }
  0x9d   :  { %1509 = vmatpush1.bf16.msra.mxu1 %v2955_v20  ;;  %1432 = vmatprep.subr.bf16.mxu0 %v2966_v23  ;;  %v3041_v20 = vld [vmem:[#allocation5 + $0x108] ss:$16 sps:$4 sm:$0xff]   ;;  %v3052_v23 = vld [vmem:[#allocation5 + $0x2ac] ss:$16 sps:$4 sm:$0xff]  }
  0x9e   :  { %1510 = vmatprep.subr.bf16.mxu1 %v2963_v22  ;;  %v3049_v22 = vld [vmem:[#allocation5 + $0x4ec] ss:$16 sps:$4 sm:$0xff]  }
  0xa0   :  { %1433 = vmatpush1.bf16.msra.mxu0 %v2964_v25  ;;  %v3050_v25 = vld [vmem:[#allocation5 + $0x2a8] ss:$16 sps:$4 sm:$0xff]  }
  0xa1   :  { %1511 = vmatpush1.bf16.msra.mxu1 %v2961_v24  ;;  %1434 = vmatprep.subr.bf16.mxu0 %v2972_v27  ;;  %v3047_v24 = vld [vmem:[#allocation5 + $0x4e8] ss:$16 sps:$4 sm:$0xff]   ;;  %v3058_v27 = vld [vmem:[#allocation5 + $0x28c] ss:$16 sps:$4 sm:$0xff]  }
  0xa2   :  { %1512 = vmatprep.subr.bf16.mxu1 %v2969_v26  ;;  %v3055_v26 = vld [vmem:[#allocation5 + $0x4cc] ss:$16 sps:$4 sm:$0xff]  }
  0xa4   :  { %1435 = vmatpush1.bf16.msra.mxu0 %v2970_v29  ;;  %v3056_v29 = vld [vmem:[#allocation5 + $0x288] ss:$16 sps:$4 sm:$0xff]  }
  0xa5   :  { %1513 = vmatpush1.bf16.msra.mxu1 %v2967_v28  ;;  %1436 = vmatprep.subr.bf16.mxu0 %v2978_v31  ;;  %v3053_v28 = vld [vmem:[#allocation5 + $0x4c8] ss:$16 sps:$4 sm:$0xff]   ;;  %v3064_v31 = vld [vmem:[#allocation5 + $0x26c] ss:$16 sps:$4 sm:$0xff]  }
  0xa6   :  { %1514 = vmatprep.subr.bf16.mxu1 %v2975_v30  ;;  %v3061_v30 = vld [vmem:[#allocation5 + $0x4ac] ss:$16 sps:$4 sm:$0xff]  }
  0xa8   :  { %1437 = vmatpush1.bf16.msra.mxu0 %v2976_v35  ;;  %v3070_v35 = vld [vmem:[#allocation5 + $0x24c] ss:$16 sps:$4 sm:$0xff]  }
  0xa9   :  { %1515 = vmatpush1.bf16.msra.mxu1 %v2973_v34  ;;  %1438 = vmatprep.subr.bf16.mxu0 %v2984_v37  ;;  %v3067_v34 = vld [vmem:[#allocation5 + $0x48c] ss:$16 sps:$4 sm:$0xff]  }
  0xaa   :  { %1516 = vmatprep.subr.bf16.mxu1 %v2981_v36  ;;  %v3065_v36 = vld [vmem:[#allocation5 + $0x488] ss:$16 sps:$4 sm:$0xff]   ;;  %v3073_v37 = vld [vmem:[#allocation5 + $0x46c] ss:$16 sps:$4 sm:$0xff]  }
  0xac   :  { %1439 = vmatpush1.bf16.msra.mxu0 %v2982_v39  ;;  %v3071_v39 = vld [vmem:[#allocation5 + $0x468] ss:$16 sps:$4 sm:$0xff]  }
  0xad   :  { %1517 = vmatpush1.bf16.msra.mxu1 %v2979_v38  ;;  %1440 = vmatprep.subr.bf16.mxu0 %v2990_v41  ;;  %v3076_v38 = vld [vmem:[#allocation5 + $0x22c] ss:$16 sps:$4 sm:$0xff]  }
  0xae   :  { %1518 = vmatprep.subr.bf16.mxu1 %v2987_v40  ;;  %v3074_v40 = vld [vmem:[#allocation5 + $0x228] ss:$16 sps:$4 sm:$0xff]   ;;  %v3082_v41 = vld [vmem:[#allocation5 + $0x20c] ss:$16 sps:$4 sm:$0xff]  }
  0xb0   :  { %1441 = vmatpush2.bf16.msra.mxu0 %v2988_v43  ;;  %v3080_v43 = vld [vmem:[#allocation5 + $0x208] ss:$16 sps:$4 sm:$0xff]  }
  0xb1   :  { %1519 = vmatpush1.bf16.msra.mxu1 %v2985_v42  ;;  %1442 = vmatprep.subr.bf16.mxu0 %v2996_v45  ;;  %v3077_v42 = vld [vmem:[#allocation5 + $0x448] ss:$16 sps:$4 sm:$0xff]   ;;  %v3088_v45 = vld [vmem:[#allocation5 + $0x3ec] ss:$16 sps:$4 sm:$0xff]  }
  0xb2   :  { %1520 = vmatprep.subr.bf16.mxu1 %v2993_v44  ;;  %v3085_v44 = vld [vmem:[#allocation5 + $0x42c] ss:$16 sps:$4 sm:$0xff]  }
  0xb4   :  { %1443 = vmatpush2.bf16.msra.mxu0 %v2994_v47  ;;  %v3086_v47 = vld [vmem:[#allocation5 + $0x3e8] ss:$16 sps:$4 sm:$0xff]  }
  0xb5   :  { %1521 = vmatpush1.bf16.msra.mxu1 %v2991_v46  ;;  %1444 = vmatprep.subr.bf16.mxu0 %v3002_v49  ;;  %v3083_v46 = vld [vmem:[#allocation5 + $0x428] ss:$16 sps:$4 sm:$0xff]   ;;  %v3094_v49 = vld [vmem:[#allocation5 + $0x3cc] ss:$16 sps:$4 sm:$0xff]  }
  0xb6   :  { %1522 = vmatprep.subr.bf16.mxu1 %v2999_v48  ;;  %v3091_v48 = vld [vmem:[#allocation5 + $0x40c] ss:$16 sps:$4 sm:$0xff]  }
  0xb8   :  { %1445 = vmatpush2.bf16.msra.mxu0 %v3000_v52  ;;  %v3092_v52 = vld [vmem:[#allocation5 + $0x3c8] ss:$16 sps:$4 sm:$0xff]  }
  0xb9   :  { %1523 = vmatpush2.bf16.msra.mxu1 %v2997_v50  ;;  %1446 = vmatprep.subr.bf16.mxu0 %v3008_v54  ;;  %v3089_v50 = vld [vmem:[#allocation5 + $0x408] ss:$16 sps:$4 sm:$0xff]   ;;  %v3100_v54 = vld [vmem:[#allocation5 + $0x3ac] ss:$16 sps:$4 sm:$0xff]  }
  0xba   :  { %1524 = vmatprep.subr.bf16.mxu1 %v3005_v53  ;;  %v3097_v53 = vld [vmem:[#allocation5 + $0x5ec] ss:$16 sps:$4 sm:$0xff]  }
  0xbc   :  { %1447 = vmatpush2.bf16.msra.mxu0 %v3006_v56  ;;  %v3098_v56 = vld [vmem:[#allocation5 + $0x3a8] ss:$16 sps:$4 sm:$0xff]  }
  0xbd   :  { %1525 = vmatpush2.bf16.msra.mxu1 %v3003_v55  ;;  %1448 = vmatprep.subr.bf16.mxu0 %v3014_v58  ;;  %v3095_v55 = vld [vmem:[#allocation5 + $0x5e8] ss:$16 sps:$4 sm:$0xff]   ;;  %v3106_v58 = vld [vmem:[#allocation5 + $0x38c] ss:$16 sps:$4 sm:$0xff]  }
  0xbe   :  { %1526 = vmatprep.subr.bf16.mxu1 %v3011_v57  ;;  %v3103_v57 = vld [vmem:[#allocation5 + $0x5cc] ss:$16 sps:$4 sm:$0xff]  }
  0xc0   :  { %1449 = vmatpush2.bf16.msra.mxu0 %v3012_v60  ;;  %v3104_v60 = vld [vmem:[#allocation5 + $0x388] ss:$16 sps:$4 sm:$0xff]  }
  0xc1   :  { %1527 = vmatpush2.bf16.msra.mxu1 %v3009_v59  ;;  %1450 = vmatprep.subr.bf16.mxu0 %v3020_v62  ;;  %v3101_v59 = vld [vmem:[#allocation5 + $0x5c8] ss:$16 sps:$4 sm:$0xff]   ;;  %v3112_v62 = vld [vmem:[#allocation5 + $0x36c] ss:$16 sps:$4 sm:$0xff]  }
  0xc2   :  { %1528 = vmatprep.subr.bf16.mxu1 %v3017_v61  ;;  %v3109_v61 = vld [vmem:[#allocation5 + $0x5ac] ss:$16 sps:$4 sm:$0xff]  }
  0xc4   :  { %1451 = vmatpush2.bf16.msra.mxu0 %v3018_v0  ;;  %v3110_v0 = vld [vmem:[#allocation5 + $0x368] ss:$16 sps:$4 sm:$0xff]  }
  0xc5   :  { %1529 = vmatpush2.bf16.msra.mxu1 %v3015_v63  ;;  %1452 = vmatprep.subr.bf16.mxu0 %v3026_v2  ;;  %v3107_v63 = vld [vmem:[#allocation5 + $0x5a8] ss:$16 sps:$4 sm:$0xff]   ;;  %v3118_v2 = vld [vmem:[#allocation5 + $0x34c] ss:$16 sps:$4 sm:$0xff]  }
  0xc6   :  { %1530 = vmatprep.subr.bf16.mxu1 %v3023_v1  ;;  %v3115_v1 = vld [vmem:[#allocation5 + $0x58c] ss:$16 sps:$4 sm:$0xff]  }
  0xc8   :  { %1453 = vmatpush2.bf16.msra.mxu0 %v3024_v4  ;;  %v3116_v4 = vld [vmem:[#allocation5 + $0x348] ss:$16 sps:$4 sm:$0xff]  }
  0xc9   :  { %1531 = vmatpush2.bf16.msra.mxu1 %v3021_v3  ;;  %1454 = vmatprep.subr.bf16.mxu0 %v3032_v8  ;;  %v3113_v3 = vld [vmem:[#allocation5 + $0x588] ss:$16 sps:$4 sm:$0xff]   ;;  %v3124_v8 = vld [vmem:[#allocation5 + $0x32c] ss:$16 sps:$4 sm:$0xff]  }
  0xca   :  { %1532 = vmatprep.subr.bf16.mxu1 %v3029_v5  ;;  %v3121_v5 = vld [vmem:[#allocation5 + $0x56c] ss:$16 sps:$4 sm:$0xff]  }
  0xcc   :  { %1455 = vmatpush2.bf16.msra.mxu0 %v3030_v10  ;;  %v3122_v10 = vld [vmem:[#allocation5 + $0x328] ss:$16 sps:$4 sm:$0xff]  }
  0xcd   :  { %1533 = vmatpush2.bf16.msra.mxu1 %v3027_v9  ;;  %1547 = vmatprep.subr.bf16.mxu0 %v3040_v12  ;;  %v3119_v9 = vld [vmem:[#allocation5 + $0x568] ss:$16 sps:$4 sm:$0xff]   ;;  %v3130_v12 = vld [vmem:[#allocation5 + $0x30c] ss:$16 sps:$4 sm:$0xff]  }
  0xce   :  { %1534 = vmatprep.subr.bf16.mxu1 %v3037_v11  ;;  %v3127_v11 = vld [vmem:[#allocation5 + $0x54c] ss:$16 sps:$4 sm:$0xff]  }
  0xcf   :  { %1457 = vmatmul.mubr.bf16.vlgmr.msra.gmra.mxu0 %v3525_v14 }
  0xd0   :  { %1548 = vmatpush1.bf16.msra.mxu0 %v3038_v16  ;;  %1579 = vmatprep.mubr.bf16.mxu0 %v3500_v51  ;;  %v3062_v51 = vld [vmem:[#allocation5 + $0x268] ss:$16 sps:$4 sm:$0xff]  }
  0xd1   :  { %1535 = vmatpush2.bf16.msra.mxu1 %v3035_v15  ;;  %1549 = vmatprep.subr.bf16.mxu0 %v3046_v19  ;;  %v3125_v15 = vld [vmem:[#allocation5 + $0x548] ss:$16 sps:$4 sm:$0xff]   ;;  %v3136_v19 = vld [vmem:[#allocation5 + $0x60c] ss:$16 sps:$4 sm:$0xff]  }
  0xd2   :  { %1536 = vmatprep.subr.bf16.mxu1 %v3043_v18  ;;  %v3128_v16 = vld [vmem:[#allocation5 + $0x308] ss:$16 sps:$4 sm:$0xff]   ;;  %v3133_v18 = vld [vmem:[#allocation5 + $0x52c] ss:$16 sps:$4 sm:$0xff]  }
  0xd4   :  { %1550 = vmatpush1.bf16.msra.mxu0 %v3044_v21  ;;  %v3134_v21 = vld [vmem:[#allocation5 + $0x608] ss:$16 sps:$4 sm:$0xff]  }
  0xd5   :  { %1537 = vmatpush2.bf16.msra.mxu1 %v3041_v20  ;;  %1551 = vmatprep.subr.bf16.mxu0 %v3052_v23  ;;  %v3131_v20 = vld [vmem:[#allocation5 + $0x528] ss:$16 sps:$4 sm:$0xff]  }
  0xd6   :  { %1588 = vmatprep.subr.bf16.mxu1 %v3049_v22  ;;  %v3139_v22 = vld [vmem:[#allocation5 + $0x50c] ss:$16 sps:$4 sm:$0xff]   ;;  %v3142_v23 = vld [vmem:[#allocation8 + $0x74] ss:$8 sps:$4 sm:$0xff]  }
  0xd8   :  { %1539 = vmatmul.mubr.bf16.vlgmr.msra.gmra.mxu1 %v3504_v6  ;;  %1552 = vmatpush1.bf16.msra.mxu0 %v3050_v25  ;;  %v3068_v6 = vld [vmem:[#allocation5 + $0x248] ss:$16 sps:$4 sm:$0xff]   ;;  %v3140_v25 = vld [vmem:[#allocation8 + $0x70] ss:$8 sps:$4 sm:$0xff]  }
  0xd9   :  { %1589 = vmatpush1.bf16.msra.mxu1 %v3047_v24  ;;  %1553 = vmatprep.subr.bf16.mxu0 %v3058_v27  ;;  %v3137_v24 = vld [vmem:[#allocation5 + $0x508] ss:$16 sps:$4 sm:$0xff]   ;;  %v3143_v27 = vld [vmem:[#allocation8 + $0x60] ss:$8 sps:$4 sm:$0xff]  }
  0xda   :  { %1590 = vmatprep.subr.bf16.mxu1 %v3055_v26  ;;  %1620 = vmatprep.mubr.bf16.mxu1 %v3520_v33  ;;  %v3079_v33 = vld [vmem:[#allocation5 + $0x44c] ss:$16 sps:$4 sm:$0xff]   ;;  %v3145_v26 = vld [vmem:[#allocation8 + $0x64] ss:$8 sps:$4 sm:$0xff]  }
  0xdc   :  { %1554 = vmatpush1.bf16.msra.mxu0 %v3056_v29  ;;  %v3151_v29 = vld [vmem:[#allocation8 + $0x44] ss:$8 sps:$4 sm:$0xff]  }
  0xdd   :  { %1591 = vmatpush1.bf16.msra.mxu1 %v3053_v28  ;;  %1555 = vmatprep.subr.bf16.mxu0 %v3064_v31  ;;  %v3148_v28 = vld [vmem:[#allocation8 + $0x54] ss:$8 sps:$4 sm:$0xff]  }
  0xde   :  { %1592 = vmatprep.subr.bf16.mxu1 %v3061_v30  ;;  %v3188_v30 = vld [vmem:[#allocation8 + $0x170] ss:$8 sps:$4 sm:$0xff]   ;;  %v3190_v31 = vld [vmem:[#allocation8 + $0x174] ss:$8 sps:$4 sm:$0xff]  }
  0xe0   :  { %1556 = vmatpush1.bf16.msra.mxu0 %v3062_v51  ;;  %v3191_v51 = vld [vmem:[#allocation8 + $0x160] ss:$8 sps:$4 sm:$0xff]  }
  0xe1   :  { %1593 = vmatpush1.bf16.msra.mxu1 %v3059_v32  ;;  %1557 = vmatprep.subr.bf16.mxu0 %v3070_v35  ;;  %v3149_v32 = vld [vmem:[#allocation8 + $0x40] ss:$8 sps:$4 sm:$0xff]   ;;  %v3194_v35 = vld [vmem:[#allocation8 + $0x150] ss:$8 sps:$4 sm:$0xff]  }
  0xe2   :  { %1594 = vmatprep.subr.bf16.mxu1 %v3067_v34  ;;  %v3152_v34 = vld [vmem:[#allocation8 + $0x30] ss:$8 sps:$4 sm:$0xff]  }
  0xe4   :  { %1558 = vmatpush1.bf16.msra.mxu0 %v3068_v6  ;;  %v3199_v6 = vld [vmem:[#allocation8 + $0x144] ss:$8 sps:$4 sm:$0xff]  }
  0xe5   :  { %1595 = vmatpush1.bf16.msra.mxu1 %v3065_v36  ;;  %1559 = vmatprep.subr.bf16.mxu0 %v3076_v38  ;;  %v3157_v36 = vld [vmem:[#allocation8 + $0x24] ss:$8 sps:$4 sm:$0xff]   ;;  %v3197_v38 = vld [vmem:[#allocation8 + $0x140] ss:$8 sps:$4 sm:$0xff]  }
  0xe6   :  { %1596 = vmatprep.subr.bf16.mxu1 %v3073_v37  ;;  %v3155_v37 = vld [vmem:[#allocation8 + $0x20] ss:$8 sps:$4 sm:$0xff]  }
  0xe8   :  { %1560 = vmatpush1.bf16.msra.mxu0 %v3074_v40  ;;  %v3202_v40 = vld [vmem:[#allocation8 + $0x134] ss:$8 sps:$4 sm:$0xff]  }
  0xe9   :  { %1597 = vmatpush1.bf16.msra.mxu1 %v3071_v39  ;;  %1561 = vmatprep.subr.bf16.mxu0 %v3082_v41  ;;  %v3160_v39 = vld [vmem:[#allocation8 + $0x14] ss:$8 sps:$4 sm:$0xff]   ;;  %v3200_v41 = vld [vmem:[#allocation8 + $0x130] ss:$8 sps:$4 sm:$0xff]  }
  0xea   :  { %1598 = vmatprep.subr.bf16.mxu1 %v3079_v33  ;;  %v3158_v33 = vld [vmem:[#allocation8 + $0x10] ss:$8 sps:$4 sm:$0xff]  }
  0xec   :  { %1562 = vmatpush1.bf16.msra.mxu0 %v3080_v43  ;;  %v3205_v43 = vld [vmem:[#allocation8 + $0x124] ss:$8 sps:$4 sm:$0xff]  }
  0xed   :  { %1599 = vmatpush1.bf16.msra.mxu1 %v3077_v42  ;;  %1563 = vmatprep.subr.bf16.mxu0 %v3088_v45  ;;  %v3163_v42 = vld [vmem:[#allocation8 + $0x4] ss:$8 sps:$4 sm:$0xff]   ;;  %v3203_v45 = vld [vmem:[#allocation8 + $0x120] ss:$8 sps:$4 sm:$0xff]  }
  0xee   :  { %1600 = vmatprep.subr.bf16.mxu1 %v3085_v44  ;;  %v3161_v44 = vld [vmem:[#allocation8] ss:$8 sps:$4 sm:$0xff]  }
  0xf0   :  { %1564 = vmatpush2.bf16.msra.mxu0 %v3086_v47  ;;  %v3208_v47 = vld [vmem:[#allocation8 + $0x114] ss:$8 sps:$4 sm:$0xff]  }
  0xf1   :  { %1601 = vmatpush1.bf16.msra.mxu1 %v3083_v46  ;;  %1565 = vmatprep.subr.bf16.mxu0 %v3094_v49  ;;  %v3166_v46 = vld [vmem:[#allocation8 + $0xf4] ss:$8 sps:$4 sm:$0xff]   ;;  %v3206_v49 = vld [vmem:[#allocation8 + $0x110] ss:$8 sps:$4 sm:$0xff]  }
  0xf2   :  { %1602 = vmatprep.subr.bf16.mxu1 %v3091_v48  ;;  %v3164_v48 = vld [vmem:[#allocation8 + $0xf0] ss:$8 sps:$4 sm:$0xff]  }
  0xf4   :  { %1566 = vmatpush2.bf16.msra.mxu0 %v3092_v52  ;;  %v3211_v52 = vld [vmem:[#allocation8 + $0x104] ss:$8 sps:$4 sm:$0xff]  }
  0xf5   :  { %1603 = vmatpush1.bf16.msra.mxu1 %v3089_v50  ;;  %1567 = vmatprep.subr.bf16.mxu0 %v3100_v54  ;;  %v3169_v50 = vld [vmem:[#allocation8 + $0xe4] ss:$8 sps:$4 sm:$0xff]   ;;  %v3209_v54 = vld [vmem:[#allocation8 + $0x100] ss:$8 sps:$4 sm:$0xff]  }
  0xf6   :  { %1604 = vmatprep.subr.bf16.mxu1 %v3097_v53  ;;  %v3167_v53 = vld [vmem:[#allocation8 + $0xe0] ss:$8 sps:$4 sm:$0xff]  }
  0xf8   :  { %1568 = vmatpush2.bf16.msra.mxu0 %v3098_v56  ;;  %v3214_v56 = vld [vmem:[#allocation8 + $0x1f4] ss:$8 sps:$4 sm:$0xff]  }
  0xf9   :  { %1605 = vmatpush2.bf16.msra.mxu1 %v3095_v55  ;;  %1569 = vmatprep.subr.bf16.mxu0 %v3106_v58  ;;  %v3172_v55 = vld [vmem:[#allocation8 + $0xd4] ss:$8 sps:$4 sm:$0xff]   ;;  %v3212_v58 = vld [vmem:[#allocation8 + $0x1f0] ss:$8 sps:$4 sm:$0xff]  }
  0xfa   :  { %1606 = vmatprep.subr.bf16.mxu1 %v3103_v57  ;;  %v3170_v57 = vld [vmem:[#allocation8 + $0xd0] ss:$8 sps:$4 sm:$0xff]  }
  0xfc   :  { %1570 = vmatpush2.bf16.msra.mxu0 %v3104_v60  ;;  %v3217_v60 = vld [vmem:[#allocation8 + $0x1e4] ss:$8 sps:$4 sm:$0xff]  }
  0xfd   :  { %1607 = vmatpush2.bf16.msra.mxu1 %v3101_v59  ;;  %1571 = vmatprep.subr.bf16.mxu0 %v3112_v62  ;;  %v3175_v59 = vld [vmem:[#allocation8 + $0xc4] ss:$8 sps:$4 sm:$0xff]   ;;  %v3215_v62 = vld [vmem:[#allocation8 + $0x1e0] ss:$8 sps:$4 sm:$0xff]  }
  0xfe   :  { %1608 = vmatprep.subr.bf16.mxu1 %v3109_v61  ;;  %v3173_v61 = vld [vmem:[#allocation8 + $0xc0] ss:$8 sps:$4 sm:$0xff]  }
 0x100   :  { %1572 = vmatpush2.bf16.msra.mxu0 %v3110_v0  ;;  %v3220_v0 = vld [vmem:[#allocation8 + $0x1d4] ss:$8 sps:$4 sm:$0xff]  }
 0x101   :  { %1609 = vmatpush2.bf16.msra.mxu1 %v3107_v63  ;;  %1573 = vmatprep.subr.bf16.mxu0 %v3118_v2  ;;  %v3178_v63 = vld [vmem:[#allocation8 + $0xb4] ss:$8 sps:$4 sm:$0xff]   ;;  %v3218_v2 = vld [vmem:[#allocation8 + $0x1d0] ss:$8 sps:$4 sm:$0xff]  }
 0x102   :  { %1610 = vmatprep.subr.bf16.mxu1 %v3115_v1  ;;  %v3176_v1 = vld [vmem:[#allocation8 + $0xb0] ss:$8 sps:$4 sm:$0xff]  }
 0x104   :  { %1574 = vmatpush2.bf16.msra.mxu0 %v3116_v4  ;;  %v3223_v4 = vld [vmem:[#allocation8 + $0x1c4] ss:$8 sps:$4 sm:$0xff]  }
 0x105   :  { %1611 = vmatpush2.bf16.msra.mxu1 %v3113_v3  ;;  %1575 = vmatprep.subr.bf16.mxu0 %v3124_v8  ;;  %v3181_v3 = vld [vmem:[#allocation8 + $0xa4] ss:$8 sps:$4 sm:$0xff]   ;;  %v3221_v8 = vld [vmem:[#allocation8 + $0x1c0] ss:$8 sps:$4 sm:$0xff]  }
 0x106   :  { %1612 = vmatprep.subr.bf16.mxu1 %v3121_v5  ;;  %v3179_v5 = vld [vmem:[#allocation8 + $0xa0] ss:$8 sps:$4 sm:$0xff]  }
 0x108   :  { %1576 = vmatpush2.bf16.msra.mxu0 %v3122_v10  ;;  %v3182_v10 = vld [vmem:[#allocation8 + $0x90] ss:$8 sps:$4 sm:$0xff]  }
 0x109   :  { %1613 = vmatpush2.bf16.msra.mxu1 %v3119_v9  ;;  %1577 = vmatprep.subr.bf16.mxu0 %v3130_v12  ;;  %v3184_v9 = vld [vmem:[#allocation8 + $0x94] ss:$8 sps:$4 sm:$0xff]  }
 0x10a   :  { %1614 = vmatprep.subr.bf16.mxu1 %v3127_v11  ;;  %v3187_v11 = vld [vmem:[#allocation8 + $0x84] ss:$8 sps:$4 sm:$0xff]  }
 0x10c   :  { %1578 = vmatpush2.bf16.msra.mxu0 %v3128_v16  ;;  %v3185_v16 = vld [vmem:[#allocation8 + $0x80] ss:$8 sps:$4 sm:$0xff]  }
 0x10d   :  { %1615 = vmatpush2.bf16.msra.mxu1 %v3125_v15  ;;  %1643 = vmatprep.subr.bf16.mxu0 %v3136_v19 }
 0x10e   :  { %1616 = vmatprep.subr.bf16.mxu1 %v3133_v18 }
 0x10f   :  { %1580 = vmatmul.mubr.bf16.vlgmr.msra.gmra.mxu0 %v3506_v7  ;;  %v3146_v7 = vld [vmem:[#allocation8 + $0x50] ss:$8 sps:$4 sm:$0xff]  }
 0x110   :  { %1644 = vmatpush1.bf16.msra.mxu0 %v3134_v21  ;;  %1661 = vmatprep.mubr.bf16.mxu0 %v3426_v13  ;;  %v3193_v13 = vld [vmem:[#allocation8 + $0x164] ss:$8 sps:$4 sm:$0xff]   ;;  %v3224_v21 = vld [vmem:[#allocation8 + $0x1b0] ss:$8 sps:$4 sm:$0xff]  }
 0x111   :  { %1617 = vmatpush2.bf16.msra.mxu1 %v3131_v20  ;;  %2074 = vmatprep.subr.bf16.mxu0 %v3142_v23  ;;  %v3226_v20 = vld [vmem:[#allocation8 + $0x1b4] ss:$8 sps:$4 sm:$0xff]  }
 0x112   :  { %1618 = vmatprep.subr.bf16.mxu1 %v3139_v22 }
 0x115   :  { %1619 = vmatpush2.bf16.msra.mxu1 %v3137_v24 }
 0x116   :  { %2115 = vmatprep.subr.bf16.mxu1 %v3190_v31 }
 0x117   :  { %2681 = vmatmul.mubr.msk.bf16.vlgmr.msra.gmra.mxu0 %vm1338_vm0, %v3511_v17  ;;  %v3196_v17 = vld [vmem:[#allocation8 + $0x154] ss:$8 sps:$4 sm:$0xff]  }
 0x118   :  { %1621 = vmatmul.mubr.bf16.vlgmr.msra.gmra.mxu1 %v3525_v14  ;;  %2075 = vmatpush1.bf16.msra.mxu0 %v3140_v25  ;;  %v3154_v14 = vld [vmem:[#allocation8 + $0x34] ss:$8 sps:$4 sm:$0xff]  }
 0x119   :  { %2076 = vmatprep.subr.bf16.mxu0 %v3145_v26  ;;  %2116 = vmatpush1.bf16.msra.mxu1 %v3188_v30  ;;  %v3229_v26 = vld [vmem:[#allocation8 + $0x1a4] ss:$8 sps:$4 sm:$0xff]   ;;  %v3230_v30 = vld [vmem:[#allocation8 + $0x190] ss:$8 sps:$4 sm:$0xff]  }
 0x11a   :  { %2117 = vmatprep.subr.bf16.mxu1 %v3193_v13 }
 0x11c   :  { %2077 = vmatpush1.bf16.msra.mxu0 %v3143_v27  ;;  %v3227_v27 = vld [vmem:[#allocation8 + $0x1a0] ss:$8 sps:$4 sm:$0xff]  }
 0x11d   :  { %2078 = vmatprep.subr.bf16.mxu0 %v3148_v28  ;;  %2118 = vmatpush1.bf16.msra.mxu1 %v3191_v51  ;;  %v3233_v51 = vld [vmem:[#allocation8 + $0x180] ss:$8 sps:$4 sm:$0xff]  }
 0x11e   :  { %2119 = vmatprep.subr.bf16.mxu1 %v3196_v17 }
 0x120   :  { %2079 = vmatpush1.bf16.msra.mxu0 %v3146_v7 }
 0x121   :  { %2080 = vmatprep.subr.bf16.mxu0 %v3151_v29  ;;  %2120 = vmatpush1.bf16.msra.mxu1 %v3194_v35  ;;  %v3232_v29 = vld [vmem:[#allocation8 + $0x194] ss:$8 sps:$4 sm:$0xff]  }
 0x122   :  { %2121 = vmatprep.subr.bf16.mxu1 %v3199_v6  ;;  %v312_v35 = vld [vmem:[#allocation7] sm:$0xf] }
 0x124   :  { %2081 = vmatpush1.bf16.msra.mxu0 %v3149_v32  ;;  %v3235_v32 = vld [vmem:[#allocation8 + $0x184] ss:$8 sps:$4 sm:$0xff]  }
 0x125   :  { %2082 = vmatprep.subr.bf16.mxu0 %v3154_v14  ;;  %2122 = vmatpush1.bf16.msra.mxu1 %v3197_v38  ;;  %v314_v14 = vlaneseq }
 0x126   :  { %2123 = vmatprep.subr.bf16.mxu1 %v3202_v40 }
 0x127   :  { %v3536_v17 = vshrl.u32 %v314_v14, 7  ;;  %v3245_v14 = vld [vmem:[#allocation10 + $0x18] sm:$0xff]  }
 0x128   :  { %2083 = vmatpush1.bf16.msra.mxu0 %v3152_v34 }
 0x129   :  { %2084 = vmatprep.subr.bf16.mxu0 %v3157_v36  ;;  %2124 = vmatpush1.bf16.msra.mxu1 %v3200_v41  ;;  %v316_v34 = vsub.s32 0, %v3536_v17  ;;  %v320_v36 = vsub.s32 1, %v3536_v17 }
 0x12a   :  { %2125 = vmatprep.subr.bf16.mxu1 %v3205_v43 }
 0x12b   :  { %v317_v6 = vrot.slane %v312_v35, %v316_v34 }
 0x12c   :  { %2085 = vmatpush1.bf16.msra.mxu0 %v3155_v37  ;;  %v321_v37 = vrot.slane %v312_v35, %v320_v36 }
 0x12d   :  { %2086 = vmatprep.subr.bf16.mxu0 %v3160_v39  ;;  %2126 = vmatpush1.bf16.msra.mxu1 %v3203_v45 }
 0x12e   :  { %2127 = vmatprep.subr.bf16.mxu1 %v3208_v47 }
 0x130   :  { %2087 = vmatpush1.bf16.msra.mxu0 %v3158_v33 }
 0x131   :  { %2088 = vmatprep.subr.bf16.mxu0 %v3163_v42  ;;  %2128 = vmatpush1.bf16.msra.mxu1 %v3206_v49 }
 0x132   :  { %2129 = vmatprep.subr.bf16.mxu1 %v3211_v52 }
 0x134   :  { %2089 = vmatpush1.bf16.msra.mxu0 %v3161_v44 }
 0x135   :  { %2090 = vmatprep.subr.bf16.mxu0 %v3166_v46  ;;  %2130 = vmatpush1.bf16.msra.mxu1 %v3209_v54 }
 0x136   :  { %2131 = vmatprep.subr.bf16.mxu1 %v3214_v56 }
 0x138   :  { %2091 = vmatpush2.bf16.msra.mxu0 %v3164_v48 }
 0x139   :  { %2092 = vmatprep.subr.bf16.mxu0 %v3169_v50  ;;  %2132 = vmatpush2.bf16.msra.mxu1 %v3212_v58  ;;  %v324_v58 = vsub.s32 2, %v3536_v17 }
 0x13a   :  { %2133 = vmatprep.subr.bf16.mxu1 %v3217_v60 }
 0x13c   :  { %2093 = vmatpush2.bf16.msra.mxu0 %v3167_v53 }
 0x13d   :  { %2094 = vmatprep.subr.bf16.mxu0 %v3172_v55  ;;  %2134 = vmatpush2.bf16.msra.mxu1 %v3215_v62 }
 0x13e   :  { %2135 = vmatprep.subr.bf16.mxu1 %v3220_v0 }
 0x140   :  { %2095 = vmatpush2.bf16.msra.mxu0 %v3170_v57 }
 0x141   :  { %2096 = vmatprep.subr.bf16.mxu0 %v3175_v59  ;;  %2136 = vmatpush2.bf16.msra.mxu1 %v3218_v2  ;;  %v328_v59 = vsub.s32 3, %v3536_v17  ;;  %v3259_v17 = vld [vmem:[#allocation11] sm:$0xff]  }
 0x142   :  { %2137 = vmatprep.subr.bf16.mxu1 %v3223_v4 }
 0x144   :  { %2097 = vmatpush2.bf16.msra.mxu0 %v3173_v61  ;;  %v325_v61 = vrot.slane %v312_v35, %v324_v58 }
 0x145   :  { %2098 = vmatprep.subr.bf16.mxu0 %v3178_v63  ;;  %2138 = vmatpush2.bf16.msra.mxu1 %v3221_v8  ;;  %v329_v63 = vrot.slane %v312_v35, %v328_v59  ;;  %v3246_v35 = vld [vmem:[#allocation10 + $0x50] sm:$0xff]  }
 0x146   :  { %2139 = vmatprep.subr.bf16.mxu1 %v3226_v20 }
 0x148   :  { %2099 = vmatpush2.bf16.msra.mxu0 %v3176_v1 }
 0x149   :  { %2100 = vmatprep.subr.bf16.mxu0 %v3181_v3  ;;  %2140 = vmatpush2.bf16.msra.mxu1 %v3224_v21 }
 0x14a   :  { %2141 = vmatprep.subr.bf16.mxu1 %v3229_v26 }
 0x14c   :  { %2101 = vmatpush2.bf16.msra.mxu0 %v3179_v5 }
 0x14d   :  { %2102 = vmatprep.subr.bf16.mxu0 %v3184_v9  ;;  %2142 = vmatpush2.bf16.msra.mxu1 %v3227_v27  ;;  %v3236_v27 = vld [vmem:[#allocation10 + $0x78] sm:$0xff]  }
 0x14e   :  { %2143 = vmatprep.subr.bf16.mxu1 %v3232_v29  ;;  %v3239_v29 = vld [vmem:[#allocation10 + $0x30] sm:$0xff]  }
 0x14f   :  { %v1376_v12 = vpop.f32.mrf.mxu0 }
 0x150   :  { %v1417_v15 = vpop.f32.mrf.mxu1  ;;  %2103 = vmatpush2.bf16.msra.mxu0 %v3182_v10  ;;  %v1377_v38 = vadd.f32 %v1376_v12, %v317_v6  ;;  %v3247_v6 = vld [vmem:[#allocation10 + $0x10] sm:$0xff]  }
 0x151   :  { %v1378_v18 = vpop.f32.mrf.mxu0  ;;  %2104 = vmatprep.subr.bf16.mxu0 %v3187_v11  ;;  %2144 = vmatpush2.bf16.msra.mxu1 %v3230_v30  ;;  %v3240_v30 = vld [vmem:[#allocation10 + $0x68] sm:$0xff]  }
 0x152   :  { %v1419_v19 = vpop.f32.mrf.mxu1  ;;  %2145 = vmatprep.subr.bf16.mxu1 %v3235_v32  ;;  %v1379_v39 = vadd.f32 %v1378_v18, %v321_v37  ;;  %v1418_v40 = vadd.f32 %v1417_v15, %v1377_v38  ;;  %v3243_v32 = vld [vmem:[#allocation10 + $0x20] sm:$0xff]   ;;  %v3248_v37 = vld [vmem:[#allocation10 + $0x48] sm:$0xff]  }
 0x153   :  { %v1380_v22 = vpop.f32.mrf.mxu0  ;;  %v3249_v38 = vld [vmem:[#allocation10 + $0x8] sm:$0xff]  }
 0x154   :  { %v1421_v23 = vpop.f32.mrf.mxu1  ;;  %2105 = vmatpush2.bf16.msra.mxu0 %v3185_v16  ;;  %v1420_v41 = vadd.f32 %v1419_v19, %v1379_v39  ;;  %v3250_v39 = vld [vmem:[#allocation10 + $0x40] sm:$0xff]  }
 0x155   :  { %v1381_v24 = vpop.f32.mrf.mxu0  ;;  %2146 = vmatpush2.bf16.msra.mxu1 %v3233_v51  ;;  %2772 = vmatprep.subr.bf16.mxu0 %v3236_v27  ;;  %v3244_v51 = vld [vmem:[#allocation10 + $0x58] sm:$0xff]  }
 0x156   :  { %v1422_v25 = vpop.f32.mrf.mxu1 }
 0x158   :  { %v1499_v28 = vpop.f32.mrf.mxu1 }
 0x15a   :  { %v1501_v7 = vpop.f32.mrf.mxu1 }
 0x15c   :  { %v1503_v31 = vpop.f32.mrf.mxu1 }
 0x15d   :  { %v3241_v31 = vld [vmem:[#allocation10 + $0x28] sm:$0xff]  }
 0x15e   :  { %v1504_v13 = vpop.f32.mrf.mxu1 }
 0x15f   :  { %v3242_v13 = vld [vmem:[#allocation10 + $0x60] sm:$0xff]  }
 0x18f   :  { %v1458_v33 = vpop.f32.mrf.mxu0 }
 0x190   :  { %v1459_v42 = vadd.f32 %v1458_v33, %v1418_v40  ;;  %v3251_v40 = vld [vmem:[#allocation10] sm:$0xff]   ;;  %v3252_v33 = vld [vmem:[#allocation11 + $0x38] sm:$0xff]  }
 0x191   :  { %v1460_v43 = vpop.f32.mrf.mxu0 }
 0x192   :  { %v1500_v44 = vadd.f32 %v1499_v28, %v1459_v42  ;;  %v1461_v45 = vadd.f32 %v1460_v43, %v1420_v41  ;;  %v3237_v28 = vld [vmem:[#allocation10 + $0x38] sm:$0xff]   ;;  %v3427_v41 = vmov 0.0   ;;  %v3253_v42 = vld [vmem:[#allocation11 + $0x30] sm:$0xff]   ;;  %v3254_v43 = vld [vmem:[#allocation11 + $0x28] sm:$0xff]  }
 0x193   :  { %v1462_v46 = vpop.f32.mrf.mxu0  ;;  %2803 = vmatprep.subr.bf16.mxu1 %v3427_v41 }
 0x194   :  { %v1502_v47 = vadd.f32 %v1501_v7, %v1461_v45  ;;  %v1670_v48 = vmax.f32 %v1500_v44, 0.0  ;;  %v3238_v7 = vld [vmem:[#allocation10 + $0x70] sm:$0xff]   ;;  %v3255_v44 = vld [vmem:[#allocation11 + $0x20] sm:$0xff]   ;;  %v3256_v45 = vld [vmem:[#allocation11 + $0x18] sm:$0xff]  }
 0x195   :  { %v1463_v49 = vpop.f32.mrf.mxu0 }
 0x196   :  { %v1671_v50 = vmax.f32 %v1502_v47, 0.0  ;;  %v1674_v54 = vpack.c.bf16 %v1670_v48, %v1670_v48 }
 0x198   :  { %v1540_v52 = vpop.f32.mrf.mxu1  ;;  %v1675_v53 = vpack.c.bf16 %v1671_v50, %v1671_v50  ;;  %v1742_v50 = vld [vmem:[%s3566_s4] sm:$0x3] }
 0x199   :  { %v1541_v1 = vadd.f32 %v1540_v52, %v325_v61  ;;  %v1747_v52 = vrot.slane %v1742_v50, %v316_v34  ;;  %v3258_v34 = vld [vmem:[#allocation11 + $0x8] sm:$0xff]  }
 0x19a   :  { %v1542_v55 = vpop.f32.mrf.mxu1  ;;  %2106 = vmatprep.mubr.bf16.mxu0 %v1675_v53  ;;  %v1751_v53 = vrot.slane %v1742_v50, %v320_v36 }
 0x19b   :  { %2107 = vmatmul.mubr.bf16.vlgmr.msra.gmra.mxu0 %v1674_v54  ;;  %v1543_v3 = vadd.f32 %v1542_v55, %v329_v63 }
 0x19c   :  { %v1544_v56 = vpop.f32.mrf.mxu1  ;;  %2773 = vmatpush3.bf16.msra.mxu0 %v3237_v28 }
 0x19d   :  { %2774 = vmatprep.subr.bf16.mxu0 %v3238_v7 }
 0x19e   :  { %v1545_v57 = vpop.f32.mrf.mxu1 }
 0x1a0   :  { %2775 = vmatpush3.bf16.msra.mxu0 %v3239_v29 }
 0x1a1   :  { %2776 = vmatprep.subr.bf16.mxu0 %v3240_v30 }
 0x1a4   :  { %2777 = vmatpush3.bf16.msra.mxu0 %v3241_v31 }
 0x1a5   :  { %2778 = vmatprep.subr.bf16.mxu0 %v3242_v13 }
 0x1a8   :  { %2779 = vmatpush3.bf16.msra.mxu0 %v3243_v32 }
 0x1a9   :  { %2780 = vmatprep.subr.bf16.mxu0 %v3244_v51 }
 0x1ac   :  { %2781 = vmatpush3.bf16.msra.mxu0 %v3245_v14 }
 0x1ad   :  { %2782 = vmatprep.subr.bf16.mxu0 %v3246_v35 }
 0x1b0   :  { %2783 = vmatpush3.bf16.msra.mxu0 %v3247_v6 }
 0x1b1   :  { %2784 = vmatprep.subr.bf16.mxu0 %v3248_v37 }
 0x1b4   :  { %2785 = vmatpush3.bf16.msra.mxu0 %v3249_v38 }
 0x1b5   :  { %2786 = vmatprep.subr.bf16.mxu0 %v3250_v39 }
 0x1b8   :  { %2787 = vmatpush3.bf16.msra.mxu0 %v3251_v40 }
 0x1cf   :  { %v1581_v60 = vpop.f32.mrf.mxu0 }
 0x1d0   :  { %v1582_v4 = vadd.f32 %v1581_v60, %v1541_v1 }
 0x1d1   :  { %v1583_v62 = vpop.f32.mrf.mxu0 }
 0x1d2   :  { %v1584_v9 = vadd.f32 %v1583_v62, %v1543_v3  ;;  %v2746_v3 = vld [vmem:[%s3568_s6] ss:$0 sm:$0xff]  ;;  %s3429_s6 = smov [#allocation13]  }
 0x1d3   :  { %v1585_v0 = vpop.f32.mrf.mxu0  ;;  %s2465_s23 = sshll.u32 %s3429_s6, 4  ;;  %s2466_s23 = int_to_ptr.vmem [resolvable:$true] %s2465_s23 }
 0x1d4   :  { %p3389_p3 = scmp.lt.s32.totalorder %s2466_s23, %s2466_s23 }
 0x1d5   :  { %v1586_v2 = vpop.f32.mrf.mxu0 }
 0x1d6   :  { %v3257_v2 = vld [vmem:[#allocation11 + $0x10] sm:$0xff]  }
 0x1d7   :  { %v1663_v8 = vpop.f32.mrf.mxu0 }
 0x1d8   :  { %v1622_v5 = vpop.f32.mrf.mxu1 }
 0x1d9   :  { %v1623_v10 = vadd.f32 %v1622_v5, %v1582_v4  ;;  %v1665_v12 = vpop.f32.mrf.mxu0 }
 0x1da   :  { %v1624_v11 = vpop.f32.mrf.mxu1 }
 0x1db   :  { %v1664_v15 = vadd.f32 %v1663_v8, %v1623_v10  ;;  %v1625_v16 = vadd.f32 %v1624_v11, %v1584_v9  ;;  %v1667_v19 = vpop.f32.mrf.mxu0 }
 0x1dc   :  { %v1626_v18 = vpop.f32.mrf.mxu1 }
 0x1dd   :  { %v1666_v20 = vadd.f32 %v1665_v12, %v1625_v16  ;;  %v1672_v21 = vmax.f32 %v1664_v15, 0.0  ;;  %v1668_v23 = vpop.f32.mrf.mxu0  ;;  %v2763_v15 = vld [vmem:[%s3570_s8] ss:$0 sm:$0xff]  ;;  %s3384_s8 = scalar_lea.vmem %s2466_s23, 128 }
 0x1de   :  { %v1627_v22 = vpop.f32.mrf.mxu1  ;;  %p3385_p2 = scmp.ne.s32.totalorder %s2466_s23, %s3384_s8  ;;  %p3390_p4 = scmp.lt.s32.totalorder %s3384_s8, %s3384_s8 }
 0x1df   :  { %v1673_v24 = vmax.f32 %v1666_v20, 0.0  ;;  %v1676_v26 = vpack.c.bf16 %v1672_v21, %v1672_v21 }
 0x1e0   :  { %p3391_p5 = por %p3390_p4, %p3389_p3 }
 0x1e1   :  { %v1677_v25 = vpack.c.bf16 %v1673_v24, %v1673_v24 }
 0x1e2   :  { %p3392_p6 = pnand %p3391_p5, %p3385_p2 }
 0x1e3   :  { %2147 = vmatprep.mubr.bf16.mxu1 %v1677_v25 }
 0x1e4   :  { %2148 = vmatmul.mubr.bf16.vlgmr.msra.gmra.mxu1 %v1676_v26 }
 0x1e5   :  { %2804 = vmatpush3.bf16.msra.mxu1 %v3252_v33  ;;  %2819 = vmatprep.mubr.msk.bf16.mxu1 %vm3428_vm1, %v3427_v41 }
 0x1e6   :  { %2805 = vmatprep.subr.bf16.mxu1 %v3427_v41 }
 0x1e9   :  { %2806 = vmatpush3.bf16.msra.mxu1 %v3253_v42 }
 0x1ea   :  { %2807 = vmatprep.subr.bf16.mxu1 %v3427_v41 }
 0x1ed   :  { %2808 = vmatpush3.bf16.msra.mxu1 %v3254_v43 }
 0x1ee   :  { %2809 = vmatprep.subr.bf16.mxu1 %v3427_v41 }
 0x1f1   :  { %2810 = vmatpush3.bf16.msra.mxu1 %v3255_v44 }
 0x1f2   :  { %2811 = vmatprep.subr.bf16.mxu1 %v3427_v41 }
 0x1f5   :  { %2812 = vmatpush3.bf16.msra.mxu1 %v3256_v45 }
 0x1f6   :  { %2813 = vmatprep.subr.bf16.mxu1 %v3427_v41 }
 0x1f9   :  { %2814 = vmatpush3.bf16.msra.mxu1 %v3257_v2 }
 0x1fa   :  { %2815 = vmatprep.subr.bf16.mxu1 %v3427_v41 }
 0x1fd   :  { %2816 = vmatpush3.bf16.msra.mxu1 %v3258_v34 }
 0x1fe   :  { %2817 = vmatprep.subr.bf16.mxu1 %v3427_v41 }
 0x201   :  { %2818 = vmatpush3.bf16.msra.mxu1 %v3259_v17 }
 0x25b   :  { %v2108_v46 = vpop.f32.mrf.mxu0 }
 0x25c   :  { %v2109_v54 = vadd.f32 %v2108_v46, %v1747_v52 }
 0x25d   :  { %v2110_v47 = vpop.f32.mrf.mxu0 }
 0x25e   :  { %v2111_v56 = vadd.f32 %v2110_v47, %v1751_v53 }
 0x25f   :  { %v2112_v48 = vpop.f32.mrf.mxu0 }
 0x261   :  { %v2113_v49 = vpop.f32.mrf.mxu0 }
 0x2a4   :  { %v2149_v55 = vpop.f32.mrf.mxu1 }
 0x2a5   :  { %v2150_v57 = vadd.f32 %v2149_v55, %v2109_v54 }
 0x2a6   :  { %v2151_v58 = vpop.f32.mrf.mxu1 }
 0x2a7   :  { %v2152_v59 = vadd.f32 %v2151_v58, %v2111_v56  ;;  %v2156_v60 = vmax.f32 %v2150_v57, 0.0 }
 0x2a8   :  { %v2153_v61 = vpop.f32.mrf.mxu1 }
 0x2a9   :  { %v2157_v62 = vmax.f32 %v2152_v59, 0.0  ;;  %v2158_v1 = vpack.c.bf16 %v2156_v60, %v2156_v60 }
 0x2aa   :  { %v2154_v63 = vpop.f32.mrf.mxu1 }
 0x2ab   :  { %v2159_v0 = vpack.c.bf16 %v2157_v62, %v2157_v62 }
 0x2ad   :  { %2327 = vmatprep.mubr.bf16.mxu0 %v2159_v0 }
 0x2ae   :  { %2328 = vmatmul.mubr.bf16.vlgmr.msra.gmra.mxu0 %v2158_v1 }
 0x36e   :  { %v2788_v36 = vpop.f32.mrf.mxu0 }
 0x370   :  { %v2789_v4 = vpop.f32.mrf.mxu0 }
 0x371   :  { %v2790_v5 = vadd.f32 %v2789_v4, %v2788_v36 }
 0x372   :  { %v2791_v8 = vpop.f32.mrf.mxu0 }
 0x373   :  { %v2330_v9 = vadd.f32 %v2790_v5, %v2746_v3 }
 0x374   :  { %v2792_v10 = vpop.f32.mrf.mxu0 }
 0x375   :  { %v2335_v11 = vmax.f32 %v2330_v9, 0.0 }
 0x377   :  { %v2336_v12 = vpack.c.bf16 %v2335_v11, %v2335_v11 }
 0x379   :  { %2820 = vmatmul.mubr.bf16.vlgmr.msra.gmra.mxu1 %v2336_v12 }
 0x439   :  { %v2442_v16 = vpop.f32.mrf.mxu1 }
 0x43a   :  { %v2443_v18 = vadd.f32 %v2763_v15, %v2442_v16 }
 0x43b   :  { %v2821_v19 = vpop.f32.mrf.mxu1 }
 0x43c   :  { %2448 = vmax.xlane.f32.xlu0 %v2443_v18 }
 0x43d   :  { %v2445_v20 = vpop.f32.mrf.mxu1 }
 0x43f   :  { %v2822_v21 = vpop.f32.mrf.mxu1 }
 0x4c5   :  { %v2449_v22 = vpop.xlane.xlu0 %2448 }
 0x4c6   :  { %v2450_v23 = vsub.f32 %v2443_v18, %v2449_v22 }
 0x4c8   :  { %v2451_v24 = vmul.f32 1.442695, %v2450_v23 }
 0x4ca   :  { %3260 = vpow2.f32 %v2451_v24 }
 0x4d7   :  { %v3261_v25 = vpop.eup %3260 }
 0x4d8   :  { %2453 = vadd.xlane.f32.xlu0 %v3261_v25 }
 0x561   :  { %v2454_v26 = vpop.xlane.xlu0 %2453 }
 0x562   :  { %3262 = vlog2.f32 %v2454_v26 }
 0x56f   :  { %v3263_v27 = vpop.eup %3262 }
 0x570   :  { %v2456_v28 = vmul.f32 0.6931472, %v3263_v27 }
 0x572   :  { %v2457_v7 = vsub.f32 %v2450_v23, %v2456_v28 }
 0x574   :  { %2458 = vst [vmem:[#allocation13] sm:$0xff] %v2457_v7 }
 0x575   :  { %3395 = shalt.err (!%p3392_p6)
}
 0x576   :  { %2468 = dma.vmem_to_hbm [thread:$0]  %s2466_s23, 128, %s3571_s9, [#allocation4]  }
 0x577   :  { %3412 = dma.done.wait [#allocation4], 128  }
 0x578   :  { %3413 = vsyncadd [#allocation4], 4294967168 }
 0x579   :  { %2472 = vsyncpa [#allocation3], 1 }
 0x57a   :  { %2473 = vsyncpa [#allocation6], 1 }
 0x57b   :  { %2474 = vsyncpa [#allocation9], 1 }
 0x57c   :  { %2475 = vsyncpa [#allocation12], 1 }
 0x57d   :  { %2476 = vsyncpa [#allocation4], 1 }

</bundles_post_ra>
